<compile_context>
chip_gen: v7x
topology: tpu7x:2x2x1
jax: 0.10.0
libtpu: 0.0.40
codegen_flags: <defaults>
</compile_context>

<pallas_src>
import functools

import jax
import jax.numpy as jnp
from jax.experimental import pallas as pl
from jax.experimental.pallas import tpu as pltpu


# ----------------------------- fused Pallas kernel ----------------------------- #

def _kickstarter_fused_kernel(
    patches_ref,                          # [B, Kp, HW]      shared im2col patches
    h0_ref,                               # [1, B, H]        this model's rnn state
    cw_ref,                               # [1, C_out, Kp]   conv weight (transposed, K padded)
    cb_ref,                               # [1, C_out, 1]    conv bias
    hw_ref,                               # [1, C_out, HW, H] head weight per conv channel
    hb_ref,                               # [1, 1, H]        head bias
    wir_ref, wiz_ref, win_ref,            # [1, H, H]        GRU input->gate weights
    whr_ref, whz_ref, whn_ref,            # [1, H, H]        GRU hidden->gate weights
    br_ref, bz_ref, bin_ref, bhn_ref,     # [1, 1, H]        GRU biases
    tw_ref,                               # [1, H, A+1]      fused [logits | value] weight
    tb_ref,                               # [1, 1, A+1]
    tail_ref,                             # out: [1, B, A+1]
    newh_ref,                             # out: [1, B, H]
):
    f32 = jnp.float32
    B = patches_ref.shape[0]
    C_out = cw_ref.shape[1]
    H = hb_ref.shape[2]

    cw = cw_ref[0]                        # [C_out, Kp]
    cb = cb_ref[0]                        # [C_out, 1]

    # Conv2d(3x3, pad=1) + ReLU as one matmul per batch item. Output stays
    # channel-major ([C_out, HW]) so the torch NCHW flatten needs no transpose.
    conv = []
    for b in range(B):
        y = jnp.dot(cw, patches_ref[b], preferred_element_type=f32) + cb   # [C_out, HW]
        conv.append(jnp.maximum(y, 0.0))

    # Head Linear + ReLU, accumulated over conv channels: every dot is a clean
    # lane-aligned [B, HW] @ [HW, H] MXU pass; no in-kernel activation reshape.
    acc = jnp.zeros((B, H), f32)
    for c in range(C_out):
        xc = jnp.concatenate([conv[b][c:c + 1, :] for b in range(B)], axis=0)   # [B, HW]
        acc = acc + jnp.dot(xc, hw_ref[0, c], preferred_element_type=f32)
    head = jnp.maximum(acc + hb_ref[0], 0.0)                                    # [B, H]

    # GRUCell (PyTorch semantics), gates pre-split into lane-aligned [H, H] blocks:
    #   r = sigmoid(x Wir + h Whr + (b_ir + b_hr))
    #   z = sigmoid(x Wiz + h Whz + (b_iz + b_hz))
    #   n = tanh(x Win + b_in + r * (h Whn + b_hn))
    #   h' = (1 - z) * n + z * h
    h_prev = h0_ref[0]                                                          # [B, H]
    r = jax.nn.sigmoid(
        jnp.dot(head, wir_ref[0], preferred_element_type=f32)
        + jnp.dot(h_prev, whr_ref[0], preferred_element_type=f32)
        + br_ref[0])
    z = jax.nn.sigmoid(
        jnp.dot(head, wiz_ref[0], preferred_element_type=f32)
        + jnp.dot(h_prev, whz_ref[0], preferred_element_type=f32)
        + bz_ref[0])
    n = jnp.tanh(
        jnp.dot(head, win_ref[0], preferred_element_type=f32) + bin_ref[0]
        + r * (jnp.dot(h_prev, whn_ref[0], preferred_element_type=f32) + bhn_ref[0]))
    h_new = (1.0 - z) * n + z * h_prev                                          # [B, H]

    # Fused tail: columns [0:A] = action logits, column [A] = value.
    tail_ref[0] = jnp.dot(h_new, tw_ref[0], preferred_element_type=f32) + tb_ref[0]
    newh_ref[0] = h_new


# ------------------------------ pallas_call wrapper ----------------------------- #

def _kickstarter_pallas(packed, patches, h0_stacked):
    num_models, B, H = h0_stacked.shape
    _, C_out, Kp = packed["conv_wT"].shape
    HW = patches.shape[2]
    A1 = packed["tail_w"].shape[2]

    def spec3(d1, d2):
        return pl.BlockSpec((1, d1, d2), lambda m: (m, 0, 0))

    in_specs = [
        pl.BlockSpec((B, Kp, HW), lambda m: (0, 0, 0)),           # shared patches (resident)
        spec3(B, H),                                               # rnn state (per model)
        spec3(C_out, Kp),                                          # conv weight
        spec3(C_out, 1),                                           # conv bias
        pl.BlockSpec((1, C_out, HW, H), lambda m: (m, 0, 0, 0)),   # head weight
        spec3(1, H),                                               # head bias
        spec3(H, H), spec3(H, H), spec3(H, H),                     # GRU W_i{r,z,n}
        spec3(H, H), spec3(H, H), spec3(H, H),                     # GRU W_h{r,z,n}
        spec3(1, H), spec3(1, H), spec3(1, H), spec3(1, H),        # GRU biases
        spec3(H, A1),                                              # tail weight
        spec3(1, A1),                                              # tail bias
    ]
    out_specs = [spec3(B, A1), spec3(B, H)]
    out_shape = [
        jax.ShapeDtypeStruct((num_models, B, A1), jnp.float32),
        jax.ShapeDtypeStruct((num_models, B, H), jnp.float32),
    ]
    return pl.pallas_call(
        _kickstarter_fused_kernel,
        out_shape=out_shape,
        grid_spec=pltpu.PrefetchScalarGridSpec(
            num_scalar_prefetch=0,
            grid=(num_models,),
            in_specs=in_specs,
            out_specs=out_specs,
        ),
        compiler_params=pltpu.CompilerParams(
            dimension_semantics=("parallel",),   # student/teacher across cores on v7x
        ),
    )(
        patches, h0_stacked,
        packed["conv_wT"], packed["conv_b"], packed["head_w3"], packed["head_b"],
        packed["gru_wir"], packed["gru_wiz"], packed["gru_win"],
        packed["gru_whr"], packed["gru_whz"], packed["gru_whn"],
        packed["gru_br"], packed["gru_bz"], packed["gru_bin"], packed["gru_bhn"],
        packed["tail_w"], packed["tail_b"],
    )


# --------------------------------- JAX glue ------------------------------------- #

def _im2col_channel_major(x, kh=3, kw=3, pad=1, k_pad_to=None):
    """x: [B, C, H, W] -> patches [B, C*kh*kw (padded), H*W] with k = c*kh*kw + ki*kw + kj,
    matching torch Conv2d weight.flatten(1) column order."""
    B, C, H, W = x.shape
    xp = jnp.pad(x, ((0, 0), (0, 0), (pad, pad), (pad, pad)))
    cols = [xp[:, :, i:i + H, j:j + W] for i in range(kh) for j in range(kw)]
    patches = jnp.stack(cols, axis=2).reshape(B, C * kh * kw, H * W)
    K = C * kh * kw
    if k_pad_to is not None and k_pad_to > K:
        patches = jnp.pad(patches, ((0, 0), (0, k_pad_to - K), (0, 0)))
    return patches


def kickstarter_forward(packed, normalized_obs, rnn_states, *, num_actions):
    """KickStarter.forward: split rnn states, run both models, concat new rnn states."""
    num_models = 2
    hidden = rnn_states.shape[1] // num_models
    Kp = packed["conv_wT"].shape[2]

    patches = _im2col_channel_major(normalized_obs, k_pad_to=Kp)          # [B, Kp, H*W]
    h0 = jnp.stack(jnp.split(rnn_states, num_models, axis=1), axis=0)     # [2, B, hidden]

    tail, new_h = _kickstarter_pallas(packed, patches, h0)

    return {
        "action_logits": tail[0, :, :num_actions],                        # student outputs
        "values": tail[0, :, num_actions:num_actions + 1],
        "new_rnn_states": jnp.concatenate([new_h[0], new_h[1]], axis=1),  # student || teacher
    }


# ------------------------------ parameter handling ------------------------------- #

def make_params(key, c_in, c_out, h, w, hidden, num_actions):
    ks = jax.random.split(key, 12)
    scale = 0.1
    flat_dim = c_out * h * w
    return {
        "conv_w": scale * jax.random.normal(ks[0], (c_in * 9, c_out), jnp.float32),
        "conv_b": scale * jax.random.normal(ks[1], (1, c_out), jnp.float32),
        "head_w": scale * jax.random.normal(ks[2], (flat_dim, hidden), jnp.float32),
        "head_b": scale * jax.random.normal(ks[3], (1, hidden), jnp.float32),
        "gru_w_ih": scale * jax.random.normal(ks[4], (hidden, 3 * hidden), jnp.float32),
        "gru_w_hh": scale * jax.random.normal(ks[5], (hidden, 3 * hidden), jnp.float32),
        "gru_b_ih": scale * jax.random.normal(ks[6], (1, 3 * hidden), jnp.float32),
        "gru_b_hh": scale * jax.random.normal(ks[7], (1, 3 * hidden), jnp.float32),
        "act_w": scale * jax.random.normal(ks[8], (hidden, num_actions), jnp.float32),
        "act_b": scale * jax.random.normal(ks[9], (1, num_actions), jnp.float32),
        "val_w": scale * jax.random.normal(ks[10], (hidden, 1), jnp.float32),
        "val_b": scale * jax.random.normal(ks[11], (1, 1), jnp.float32),
    }


def pack_kickstarter_params(student, teacher):
    """One-time repack of per-model params into kernel-friendly stacked layouts."""
    K, C_out = student["conv_w"].shape
    Kp = ((K + 7) // 8) * 8                     # pad conv K dim to a sublane multiple
    hidden = student["gru_w_hh"].shape[0]
    HW = student["head_w"].shape[0] // C_out
    H = hidden

    def stack(fn):
        return jnp.stack([fn(student), fn(teacher)], axis=0)

    return {
        "conv_wT": stack(lambda p: jnp.pad(p["conv_w"].T, ((0, 0), (0, Kp - K)))),  # [2,C_out,Kp]
        "conv_b": stack(lambda p: p["conv_b"].T),                                   # [2,C_out,1]
        # torch NCHW flatten rows (c*HW + p) -> per-channel [HW, hidden] blocks
        "head_w3": stack(lambda p: p["head_w"].reshape(C_out, HW, hidden)),
        "head_b": stack(lambda p: p["head_b"]),
        "gru_wir": stack(lambda p: p["gru_w_ih"][:, :H]),
        "gru_wiz": stack(lambda p: p["gru_w_ih"][:, H:2 * H]),
        "gru_win": stack(lambda p: p["gru_w_ih"][:, 2 * H:]),
        "gru_whr": stack(lambda p: p["gru_w_hh"][:, :H]),
        "gru_whz": stack(lambda p: p["gru_w_hh"][:, H:2 * H]),
        "gru_whn": stack(lambda p: p["gru_w_hh"][:, 2 * H:]),
        "gru_br": stack(lambda p: p["gru_b_ih"][:, :H] + p["gru_b_hh"][:, :H]),
        "gru_bz": stack(lambda p: p["gru_b_ih"][:, H:2 * H] + p["gru_b_hh"][:, H:2 * H]),
        "gru_bin": stack(lambda p: p["gru_b_ih"][:, 2 * H:]),
        "gru_bhn": stack(lambda p: p["gru_b_hh"][:, 2 * H:]),
        "tail_w": stack(lambda p: jnp.concatenate([p["act_w"], p["val_w"]], axis=1)),  # [2,H,A+1]
        "tail_b": stack(lambda p: jnp.concatenate([p["act_b"], p["val_b"]], axis=1)),
    }


# ------------------------------ pure-JAX reference -------------------------------- #

def _reference_forward(student, teacher, obs, rnn_states):
    B, C, H, W = obs.shape

    def one(p, h):
        C_out = p["conv_w"].shape[1]
        xp = jnp.pad(obs, ((0, 0), (0, 0), (1, 1), (1, 1)))
        cols = [xp[:, :, i:i + H, j:j + W] for i in range(3) for j in range(3)]
        patches = jnp.stack(cols, axis=2).reshape(B, C * 9, H * W)
        patches = jnp.transpose(patches, (0, 2, 1)).reshape(B * H * W, C * 9)
        conv = jax.nn.relu(patches @ p["conv_w"] + p["conv_b"])              # [B*HW, C_out]
        flat = jnp.transpose(conv.reshape(B, H * W, C_out), (0, 2, 1)).reshape(B, C_out * H * W)
        head = jax.nn.relu(flat @ p["head_w"] + p["head_b"])
        gi = head @ p["gru_w_ih"] + p["gru_b_ih"]
        gh = h @ p["gru_w_hh"] + p["gru_b_hh"]
        Hh = h.shape[1]
        r = jax.nn.sigmoid(gi[:, :Hh] + gh[:, :Hh])
        z = jax.nn.sigmoid(gi[:, Hh:2 * Hh] + gh[:, Hh:2 * Hh])
        n = jnp.tanh(gi[:, 2 * Hh:] + r * gh[:, 2 * Hh:])
        h_new = (1.0 - z) * n + z * h
        return h_new @ p["act_w"] + p["act_b"], h_new @ p["val_w"] + p["val_b"], h_new

    s_h, t_h = jnp.split(rnn_states, 2, axis=1)
    s_log, s_val, s_new = one(student, s_h)
    _, _, t_new = one(teacher, t_h)
    return {"action_logits": s_log, "values": s_val,
            "new_rnn_states": jnp.concatenate([s_new, t_new], axis=1)}


# TODO(synk): forward_core's PackedSequence branch (pack_padded_sequence /
# pad_packed_sequence) has no clean Pallas equivalent; only the dense-tensor
# forward() path is implemented here.

if __name__ == "__main__":
    B, C_IN, SPATIAL, HIDDEN, C_OUT, NUM_ACTIONS = 2, 4, 16, 32, 8, 8

    root = jax.random.PRNGKey(0)
    k_obs, k_rnn, k_student, k_teacher = jax.random.split(root, 4)

    obs = jax.random.normal(k_obs, (B, C_IN, SPATIAL, SPATIAL), jnp.float32)   # NCHW
    rnn_states = jax.random.normal(k_rnn, (B, 2 * HIDDEN), jnp.float32)        # student||teacher

    student_params = make_params(k_student, C_IN, C_OUT, SPATIAL, SPATIAL, HIDDEN, NUM_ACTIONS)
    teacher_params = make_params(k_teacher, C_IN, C_OUT, SPATIAL, SPATIAL, HIDDEN, NUM_ACTIONS)
    packed = pack_kickstarter_params(student_params, teacher_params)

    fwd = jax.jit(functools.partial(kickstarter_forward, num_actions=NUM_ACTIONS))
    out = fwd(packed, obs, rnn_states)
    jax.block_until_ready(out)

    assert out["action_logits"].shape == (B, NUM_ACTIONS)
    assert out["values"].shape == (B, 1)
    assert out["new_rnn_states"].shape == (B, 2 * HIDDEN)

    ref = _reference_forward(student_params, teacher_params, obs, rnn_states)
    for key in ("action_logits", "values", "new_rnn_states"):
        assert jnp.allclose(out[key], ref[key], atol=1e-3, rtol=1e-3), key

    print("KERNEL_OK")
</pallas_src>

<mosaic_0001>
module attributes {stable_mosaic.version = 11 : i64} {
  func.func @_kickstarter_fused_kernel(%arg0: i32, %arg1: memref<2x40x256xf32, #tpu.memory_space<vmem>>, %arg2: memref<1x2x32xf32, #tpu.memory_space<vmem>>, %arg3: memref<1x8x40xf32, #tpu.memory_space<vmem>>, %arg4: memref<1x8x1xf32, #tpu.memory_space<vmem>>, %arg5: memref<1x8x256x32xf32, #tpu.memory_space<vmem>>, %arg6: memref<1x1x32xf32, #tpu.memory_space<vmem>>, %arg7: memref<1x32x32xf32, #tpu.memory_space<vmem>>, %arg8: memref<1x32x32xf32, #tpu.memory_space<vmem>>, %arg9: memref<1x32x32xf32, #tpu.memory_space<vmem>>, %arg10: memref<1x32x32xf32, #tpu.memory_space<vmem>>, %arg11: memref<1x32x32xf32, #tpu.memory_space<vmem>>, %arg12: memref<1x32x32xf32, #tpu.memory_space<vmem>>, %arg13: memref<1x1x32xf32, #tpu.memory_space<vmem>>, %arg14: memref<1x1x32xf32, #tpu.memory_space<vmem>>, %arg15: memref<1x1x32xf32, #tpu.memory_space<vmem>>, %arg16: memref<1x1x32xf32, #tpu.memory_space<vmem>>, %arg17: memref<1x32x9xf32, #tpu.memory_space<vmem>>, %arg18: memref<1x1x9xf32, #tpu.memory_space<vmem>>, %arg19: memref<1x2x9xf32, #tpu.memory_space<vmem>>, %arg20: memref<1x2x32xf32, #tpu.memory_space<vmem>>) attributes {dimension_semantics = [#tpu.dimension_semantics<parallel>], iteration_bounds = array<i64: 2>, scalar_prefetch = 0 : i64, scratch_operands = 0 : i64, tpu.core_type = #tpu.core_type<tc>, window_params = [{pipeline_mode = #tpu.pipeline_mode<synchronous>, transform_indices = @transform_0, window_bounds = array<i64: 2, 40, 256>}, {transform_indices = @transform_1, window_bounds = array<i64: 1, 2, 32>}, {transform_indices = @transform_2, window_bounds = array<i64: 1, 8, 40>}, {transform_indices = @transform_3, window_bounds = array<i64: 1, 8, 1>}, {transform_indices = @transform_4, window_bounds = array<i64: 1, 8, 256, 32>}, {transform_indices = @transform_5, window_bounds = array<i64: 1, 1, 32>}, {transform_indices = @transform_6, window_bounds = array<i64: 1, 32, 32>}, {transform_indices = @transform_7, window_bounds = array<i64: 1, 32, 32>}, {transform_indices = @transform_8, window_bounds = array<i64: 1, 32, 32>}, {transform_indices = @transform_9, window_bounds = array<i64: 1, 32, 32>}, {transform_indices = @transform_10, window_bounds = array<i64: 1, 32, 32>}, {transform_indices = @transform_11, window_bounds = array<i64: 1, 32, 32>}, {transform_indices = @transform_12, window_bounds = array<i64: 1, 1, 32>}, {transform_indices = @transform_13, window_bounds = array<i64: 1, 1, 32>}, {transform_indices = @transform_14, window_bounds = array<i64: 1, 1, 32>}, {transform_indices = @transform_15, window_bounds = array<i64: 1, 1, 32>}, {transform_indices = @transform_16, window_bounds = array<i64: 1, 32, 9>}, {transform_indices = @transform_17, window_bounds = array<i64: 1, 1, 9>}, {transform_indices = @transform_18, window_bounds = array<i64: 1, 2, 9>}, {transform_indices = @transform_19, window_bounds = array<i64: 1, 2, 32>}]} {
    %c0 = arith.constant 0 : index
    %c0_0 = arith.constant 0 : index
    %c0_1 = arith.constant 0 : index
    %0 = vector.load %arg3[%c0, %c0_0, %c0_1] : memref<1x8x40xf32, #tpu.memory_space<vmem>>, vector<1x8x40xf32>
    %1 = vector.shape_cast %0 : vector<1x8x40xf32> to vector<8x40xf32>
    %c0_2 = arith.constant 0 : index
    %c0_3 = arith.constant 0 : index
    %c0_4 = arith.constant 0 : index
    %2 = vector.load %arg4[%c0_2, %c0_3, %c0_4] : memref<1x8x1xf32, #tpu.memory_space<vmem>>, vector<1x8x1xf32>
    %3 = vector.shape_cast %2 : vector<1x8x1xf32> to vector<8x1xf32>
    %c0_5 = arith.constant 0 : index
    %c0_6 = arith.constant 0 : index
    %c0_7 = arith.constant 0 : index
    %4 = vector.load %arg1[%c0_5, %c0_6, %c0_7] : memref<2x40x256xf32, #tpu.memory_space<vmem>>, vector<1x40x256xf32>
    %5 = vector.shape_cast %4 : vector<1x40x256xf32> to vector<40x256xf32>
    %cst = arith.constant dense<0.000000e+00> : vector<8x256xf32>
    %6 = tpu.matmul %1, %5, %cst {dimension_numbers = #tpu.dot_dimension_numbers<[1], [0], [0], [1], [0, 0, 1, 1], [], []>} : vector<8x40xf32>, vector<40x256xf32>, vector<8x256xf32> -> vector<8x256xf32>
    %7 = vector.broadcast %3 : vector<8x1xf32> to vector<8x256xf32>
    %8 = arith.addf %6, %7 : vector<8x256xf32>
    %cst_8 = arith.constant 0.000000e+00 : f32
    %9 = vector.broadcast %cst_8 : f32 to vector<8x256xf32>
    %10 = arith.maximumf %8, %9 : vector<8x256xf32>
    %c1 = arith.constant 1 : index
    %c0_9 = arith.constant 0 : index
    %c0_10 = arith.constant 0 : index
    %11 = vector.load %arg1[%c1, %c0_9, %c0_10] : memref<2x40x256xf32, #tpu.memory_space<vmem>>, vector<1x40x256xf32>
    %12 = vector.shape_cast %11 : vector<1x40x256xf32> to vector<40x256xf32>
    %cst_11 = arith.constant dense<0.000000e+00> : vector<8x256xf32>
    %13 = tpu.matmul %1, %12, %cst_11 {dimension_numbers = #tpu.dot_dimension_numbers<[1], [0], [0], [1], [0, 0, 1, 1], [], []>} : vector<8x40xf32>, vector<40x256xf32>, vector<8x256xf32> -> vector<8x256xf32>
    %14 = vector.broadcast %3 : vector<8x1xf32> to vector<8x256xf32>
    %15 = arith.addf %13, %14 : vector<8x256xf32>
    %cst_12 = arith.constant 0.000000e+00 : f32
    %16 = vector.broadcast %cst_12 : f32 to vector<8x256xf32>
    %17 = arith.maximumf %15, %16 : vector<8x256xf32>
    %cst_13 = arith.constant 0.000000e+00 : f32
    %18 = vector.broadcast %cst_13 : f32 to vector<2x32xf32>
    %19 = vector.extract_strided_slice %10 {offsets = [0, 0], sizes = [1, 256], strides = [1, 1]} : vector<8x256xf32> to vector<1x256xf32>
    %20 = vector.extract_strided_slice %17 {offsets = [0, 0], sizes = [1, 256], strides = [1, 1]} : vector<8x256xf32> to vector<1x256xf32>
    %21 = tpu.concatenate %19, %20 in 0 : vector<1x256xf32>, vector<1x256xf32> -> vector<2x256xf32>
    %c0_14 = arith.constant 0 : index
    %c0_15 = arith.constant 0 : index
    %c0_16 = arith.constant 0 : index
    %c0_17 = arith.constant 0 : index
    %22 = vector.load %arg5[%c0_14, %c0_15, %c0_16, %c0_17] : memref<1x8x256x32xf32, #tpu.memory_space<vmem>>, vector<1x1x256x32xf32>
    %23 = vector.shape_cast %22 : vector<1x1x256x32xf32> to vector<256x32xf32>
    %cst_18 = arith.constant dense<0.000000e+00> : vector<2x32xf32>
    %24 = tpu.matmul %21, %23, %cst_18 {dimension_numbers = #tpu.dot_dimension_numbers<[1], [0], [0], [1], [0, 0, 1, 1], [], []>} : vector<2x256xf32>, vector<256x32xf32>, vector<2x32xf32> -> vector<2x32xf32>
    %25 = arith.addf %18, %24 : vector<2x32xf32>
    %26 = vector.extract_strided_slice %10 {offsets = [1, 0], sizes = [1, 256], strides = [1, 1]} : vector<8x256xf32> to vector<1x256xf32>
    %27 = vector.extract_strided_slice %17 {offsets = [1, 0], sizes = [1, 256], strides = [1, 1]} : vector<8x256xf32> to vector<1x256xf32>
    %28 = tpu.concatenate %26, %27 in 0 : vector<1x256xf32>, vector<1x256xf32> -> vector<2x256xf32>
    %c0_19 = arith.constant 0 : index
    %c1_20 = arith.constant 1 : index
    %c0_21 = arith.constant 0 : index
    %c0_22 = arith.constant 0 : index
    %29 = vector.load %arg5[%c0_19, %c1_20, %c0_21, %c0_22] : memref<1x8x256x32xf32, #tpu.memory_space<vmem>>, vector<1x1x256x32xf32>
    %30 = vector.shape_cast %29 : vector<1x1x256x32xf32> to vector<256x32xf32>
    %cst_23 = arith.constant dense<0.000000e+00> : vector<2x32xf32>
    %31 = tpu.matmul %28, %30, %cst_23 {dimension_numbers = #tpu.dot_dimension_numbers<[1], [0], [0], [1], [0, 0, 1, 1], [], []>} : vector<2x256xf32>, vector<256x32xf32>, vector<2x32xf32> -> vector<2x32xf32>
    %32 = arith.addf %25, %31 : vector<2x32xf32>
    %33 = vector.extract_strided_slice %10 {offsets = [2, 0], sizes = [1, 256], strides = [1, 1]} : vector<8x256xf32> to vector<1x256xf32>
    %34 = vector.extract_strided_slice %17 {offsets = [2, 0], sizes = [1, 256], strides = [1, 1]} : vector<8x256xf32> to vector<1x256xf32>
    %35 = tpu.concatenate %33, %34 in 0 : vector<1x256xf32>, vector<1x256xf32> -> vector<2x256xf32>
    %c0_24 = arith.constant 0 : index
    %c2 = arith.constant 2 : index
    %c0_25 = arith.constant 0 : index
    %c0_26 = arith.constant 0 : index
    %36 = vector.load %arg5[%c0_24, %c2, %c0_25, %c0_26] : memref<1x8x256x32xf32, #tpu.memory_space<vmem>>, vector<1x1x256x32xf32>
    %37 = vector.shape_cast %36 : vector<1x1x256x32xf32> to vector<256x32xf32>
    %cst_27 = arith.constant dense<0.000000e+00> : vector<2x32xf32>
    %38 = tpu.matmul %35, %37, %cst_27 {dimension_numbers = #tpu.dot_dimension_numbers<[1], [0], [0], [1], [0, 0, 1, 1], [], []>} : vector<2x256xf32>, vector<256x32xf32>, vector<2x32xf32> -> vector<2x32xf32>
    %39 = arith.addf %32, %38 : vector<2x32xf32>
    %40 = vector.extract_strided_slice %10 {offsets = [3, 0], sizes = [1, 256], strides = [1, 1]} : vector<8x256xf32> to vector<1x256xf32>
    %41 = vector.extract_strided_slice %17 {offsets = [3, 0], sizes = [1, 256], strides = [1, 1]} : vector<8x256xf32> to vector<1x256xf32>
    %42 = tpu.concatenate %40, %41 in 0 : vector<1x256xf32>, vector<1x256xf32> -> vector<2x256xf32>
    %c0_28 = arith.constant 0 : index
    %c3 = arith.constant 3 : index
    %c0_29 = arith.constant 0 : index
    %c0_30 = arith.constant 0 : index
    %43 = vector.load %arg5[%c0_28, %c3, %c0_29, %c0_30] : memref<1x8x256x32xf32, #tpu.memory_space<vmem>>, vector<1x1x256x32xf32>
    %44 = vector.shape_cast %43 : vector<1x1x256x32xf32> to vector<256x32xf32>
    %cst_31 = arith.constant dense<0.000000e+00> : vector<2x32xf32>
    %45 = tpu.matmul %42, %44, %cst_31 {dimension_numbers = #tpu.dot_dimension_numbers<[1], [0], [0], [1], [0, 0, 1, 1], [], []>} : vector<2x256xf32>, vector<256x32xf32>, vector<2x32xf32> -> vector<2x32xf32>
    %46 = arith.addf %39, %45 : vector<2x32xf32>
    %47 = vector.extract_strided_slice %10 {offsets = [4, 0], sizes = [1, 256], strides = [1, 1]} : vector<8x256xf32> to vector<1x256xf32>
    %48 = vector.extract_strided_slice %17 {offsets = [4, 0], sizes = [1, 256], strides = [1, 1]} : vector<8x256xf32> to vector<1x256xf32>
    %49 = tpu.concatenate %47, %48 in 0 : vector<1x256xf32>, vector<1x256xf32> -> vector<2x256xf32>
    %c0_32 = arith.constant 0 : index
    %c4 = arith.constant 4 : index
    %c0_33 = arith.constant 0 : index
    %c0_34 = arith.constant 0 : index
    %50 = vector.load %arg5[%c0_32, %c4, %c0_33, %c0_34] : memref<1x8x256x32xf32, #tpu.memory_space<vmem>>, vector<1x1x256x32xf32>
    %51 = vector.shape_cast %50 : vector<1x1x256x32xf32> to vector<256x32xf32>
    %cst_35 = arith.constant dense<0.000000e+00> : vector<2x32xf32>
    %52 = tpu.matmul %49, %51, %cst_35 {dimension_numbers = #tpu.dot_dimension_numbers<[1], [0], [0], [1], [0, 0, 1, 1], [], []>} : vector<2x256xf32>, vector<256x32xf32>, vector<2x32xf32> -> vector<2x32xf32>
    %53 = arith.addf %46, %52 : vector<2x32xf32>
    %54 = vector.extract_strided_slice %10 {offsets = [5, 0], sizes = [1, 256], strides = [1, 1]} : vector<8x256xf32> to vector<1x256xf32>
    %55 = vector.extract_strided_slice %17 {offsets = [5, 0], sizes = [1, 256], strides = [1, 1]} : vector<8x256xf32> to vector<1x256xf32>
    %56 = tpu.concatenate %54, %55 in 0 : vector<1x256xf32>, vector<1x256xf32> -> vector<2x256xf32>
    %c0_36 = arith.constant 0 : index
    %c5 = arith.constant 5 : index
    %c0_37 = arith.constant 0 : index
    %c0_38 = arith.constant 0 : index
    %57 = vector.load %arg5[%c0_36, %c5, %c0_37, %c0_38] : memref<1x8x256x32xf32, #tpu.memory_space<vmem>>, vector<1x1x256x32xf32>
    %58 = vector.shape_cast %57 : vector<1x1x256x32xf32> to vector<256x32xf32>
    %cst_39 = arith.constant dense<0.000000e+00> : vector<2x32xf32>
    %59 = tpu.matmul %56, %58, %cst_39 {dimension_numbers = #tpu.dot_dimension_numbers<[1], [0], [0], [1], [0, 0, 1, 1], [], []>} : vector<2x256xf32>, vector<256x32xf32>, vector<2x32xf32> -> vector<2x32xf32>
    %60 = arith.addf %53, %59 : vector<2x32xf32>
    %61 = vector.extract_strided_slice %10 {offsets = [6, 0], sizes = [1, 256], strides = [1, 1]} : vector<8x256xf32> to vector<1x256xf32>
    %62 = vector.extract_strided_slice %17 {offsets = [6, 0], sizes = [1, 256], strides = [1, 1]} : vector<8x256xf32> to vector<1x256xf32>
    %63 = tpu.concatenate %61, %62 in 0 : vector<1x256xf32>, vector<1x256xf32> -> vector<2x256xf32>
    %c0_40 = arith.constant 0 : index
    %c6 = arith.constant 6 : index
    %c0_41 = arith.constant 0 : index
    %c0_42 = arith.constant 0 : index
    %64 = vector.load %arg5[%c0_40, %c6, %c0_41, %c0_42] : memref<1x8x256x32xf32, #tpu.memory_space<vmem>>, vector<1x1x256x32xf32>
    %65 = vector.shape_cast %64 : vector<1x1x256x32xf32> to vector<256x32xf32>
    %cst_43 = arith.constant dense<0.000000e+00> : vector<2x32xf32>
    %66 = tpu.matmul %63, %65, %cst_43 {dimension_numbers = #tpu.dot_dimension_numbers<[1], [0], [0], [1], [0, 0, 1, 1], [], []>} : vector<2x256xf32>, vector<256x32xf32>, vector<2x32xf32> -> vector<2x32xf32>
    %67 = arith.addf %60, %66 : vector<2x32xf32>
    %68 = vector.extract_strided_slice %10 {offsets = [7, 0], sizes = [1, 256], strides = [1, 1]} : vector<8x256xf32> to vector<1x256xf32>
    %69 = vector.extract_strided_slice %17 {offsets = [7, 0], sizes = [1, 256], strides = [1, 1]} : vector<8x256xf32> to vector<1x256xf32>
    %70 = tpu.concatenate %68, %69 in 0 : vector<1x256xf32>, vector<1x256xf32> -> vector<2x256xf32>
    %c0_44 = arith.constant 0 : index
    %c7 = arith.constant 7 : index
    %c0_45 = arith.constant 0 : index
    %c0_46 = arith.constant 0 : index
    %71 = vector.load %arg5[%c0_44, %c7, %c0_45, %c0_46] : memref<1x8x256x32xf32, #tpu.memory_space<vmem>>, vector<1x1x256x32xf32>
    %72 = vector.shape_cast %71 : vector<1x1x256x32xf32> to vector<256x32xf32>
    %cst_47 = arith.constant dense<0.000000e+00> : vector<2x32xf32>
    %73 = tpu.matmul %70, %72, %cst_47 {dimension_numbers = #tpu.dot_dimension_numbers<[1], [0], [0], [1], [0, 0, 1, 1], [], []>} : vector<2x256xf32>, vector<256x32xf32>, vector<2x32xf32> -> vector<2x32xf32>
    %74 = arith.addf %67, %73 : vector<2x32xf32>
    %c0_48 = arith.constant 0 : index
    %c0_49 = arith.constant 0 : index
    %c0_50 = arith.constant 0 : index
    %75 = vector.load %arg6[%c0_48, %c0_49, %c0_50] : memref<1x1x32xf32, #tpu.memory_space<vmem>>, vector<1x1x32xf32>
    %76 = vector.shape_cast %75 : vector<1x1x32xf32> to vector<1x32xf32>
    %77 = vector.broadcast %76 : vector<1x32xf32> to vector<2x32xf32>
    %78 = arith.addf %74, %77 : vector<2x32xf32>
    %cst_51 = arith.constant 0.000000e+00 : f32
    %79 = vector.broadcast %cst_51 : f32 to vector<2x32xf32>
    %80 = arith.maximumf %78, %79 : vector<2x32xf32>
    %c0_52 = arith.constant 0 : index
    %c0_53 = arith.constant 0 : index
    %c0_54 = arith.constant 0 : index
    %81 = vector.load %arg2[%c0_52, %c0_53, %c0_54] : memref<1x2x32xf32, #tpu.memory_space<vmem>>, vector<1x2x32xf32>
    %82 = vector.shape_cast %81 : vector<1x2x32xf32> to vector<2x32xf32>
    %c0_55 = arith.constant 0 : index
    %c0_56 = arith.constant 0 : index
    %c0_57 = arith.constant 0 : index
    %83 = vector.load %arg7[%c0_55, %c0_56, %c0_57] : memref<1x32x32xf32, #tpu.memory_space<vmem>>, vector<1x32x32xf32>
    %84 = vector.shape_cast %83 : vector<1x32x32xf32> to vector<32x32xf32>
    %cst_58 = arith.constant dense<0.000000e+00> : vector<2x32xf32>
    %85 = tpu.matmul %80, %84, %cst_58 {dimension_numbers = #tpu.dot_dimension_numbers<[1], [0], [0], [1], [0, 0, 1, 1], [], []>} : vector<2x32xf32>, vector<32x32xf32>, vector<2x32xf32> -> vector<2x32xf32>
    %c0_59 = arith.constant 0 : index
    %c0_60 = arith.constant 0 : index
    %c0_61 = arith.constant 0 : index
    %86 = vector.load %arg10[%c0_59, %c0_60, %c0_61] : memref<1x32x32xf32, #tpu.memory_space<vmem>>, vector<1x32x32xf32>
    %87 = vector.shape_cast %86 : vector<1x32x32xf32> to vector<32x32xf32>
    %cst_62 = arith.constant dense<0.000000e+00> : vector<2x32xf32>
    %88 = tpu.matmul %82, %87, %cst_62 {dimension_numbers = #tpu.dot_dimension_numbers<[1], [0], [0], [1], [0, 0, 1, 1], [], []>} : vector<2x32xf32>, vector<32x32xf32>, vector<2x32xf32> -> vector<2x32xf32>
    %89 = arith.addf %85, %88 : vector<2x32xf32>
    %c0_63 = arith.constant 0 : index
    %c0_64 = arith.constant 0 : index
    %c0_65 = arith.constant 0 : index
    %90 = vector.load %arg13[%c0_63, %c0_64, %c0_65] : memref<1x1x32xf32, #tpu.memory_space<vmem>>, vector<1x1x32xf32>
    %91 = vector.shape_cast %90 : vector<1x1x32xf32> to vector<1x32xf32>
    %92 = vector.broadcast %91 : vector<1x32xf32> to vector<2x32xf32>
    %93 = arith.addf %89, %92 : vector<2x32xf32>
    %94 = arith.negf %93 : vector<2x32xf32>
    %95 = math.exp %94 : vector<2x32xf32>
    %cst_66 = arith.constant 1.000000e+00 : f32
    %96 = vector.broadcast %cst_66 : f32 to vector<2x32xf32>
    %97 = arith.addf %96, %95 : vector<2x32xf32>
    %98 = arith.divf %96, %97 : vector<2x32xf32>
    %c0_67 = arith.constant 0 : index
    %c0_68 = arith.constant 0 : index
    %c0_69 = arith.constant 0 : index
    %99 = vector.load %arg8[%c0_67, %c0_68, %c0_69] : memref<1x32x32xf32, #tpu.memory_space<vmem>>, vector<1x32x32xf32>
    %100 = vector.shape_cast %99 : vector<1x32x32xf32> to vector<32x32xf32>
    %cst_70 = arith.constant dense<0.000000e+00> : vector<2x32xf32>
    %101 = tpu.matmul %80, %100, %cst_70 {dimension_numbers = #tpu.dot_dimension_numbers<[1], [0], [0], [1], [0, 0, 1, 1], [], []>} : vector<2x32xf32>, vector<32x32xf32>, vector<2x32xf32> -> vector<2x32xf32>
    %c0_71 = arith.constant 0 : index
    %c0_72 = arith.constant 0 : index
    %c0_73 = arith.constant 0 : index
    %102 = vector.load %arg11[%c0_71, %c0_72, %c0_73] : memref<1x32x32xf32, #tpu.memory_space<vmem>>, vector<1x32x32xf32>
    %103 = vector.shape_cast %102 : vector<1x32x32xf32> to vector<32x32xf32>
    %cst_74 = arith.constant dense<0.000000e+00> : vector<2x32xf32>
    %104 = tpu.matmul %82, %103, %cst_74 {dimension_numbers = #tpu.dot_dimension_numbers<[1], [0], [0], [1], [0, 0, 1, 1], [], []>} : vector<2x32xf32>, vector<32x32xf32>, vector<2x32xf32> -> vector<2x32xf32>
    %105 = arith.addf %101, %104 : vector<2x32xf32>
    %c0_75 = arith.constant 0 : index
    %c0_76 = arith.constant 0 : index
    %c0_77 = arith.constant 0 : index
    %106 = vector.load %arg14[%c0_75, %c0_76, %c0_77] : memref<1x1x32xf32, #tpu.memory_space<vmem>>, vector<1x1x32xf32>
    %107 = vector.shape_cast %106 : vector<1x1x32xf32> to vector<1x32xf32>
    %108 = vector.broadcast %107 : vector<1x32xf32> to vector<2x32xf32>
    %109 = arith.addf %105, %108 : vector<2x32xf32>
    %110 = arith.negf %109 : vector<2x32xf32>
    %111 = math.exp %110 : vector<2x32xf32>
    %cst_78 = arith.constant 1.000000e+00 : f32
    %112 = vector.broadcast %cst_78 : f32 to vector<2x32xf32>
    %113 = arith.addf %112, %111 : vector<2x32xf32>
    %114 = arith.divf %112, %113 : vector<2x32xf32>
    %c0_79 = arith.constant 0 : index
    %c0_80 = arith.constant 0 : index
    %c0_81 = arith.constant 0 : index
    %115 = vector.load %arg9[%c0_79, %c0_80, %c0_81] : memref<1x32x32xf32, #tpu.memory_space<vmem>>, vector<1x32x32xf32>
    %116 = vector.shape_cast %115 : vector<1x32x32xf32> to vector<32x32xf32>
    %cst_82 = arith.constant dense<0.000000e+00> : vector<2x32xf32>
    %117 = tpu.matmul %80, %116, %cst_82 {dimension_numbers = #tpu.dot_dimension_numbers<[1], [0], [0], [1], [0, 0, 1, 1], [], []>} : vector<2x32xf32>, vector<32x32xf32>, vector<2x32xf32> -> vector<2x32xf32>
    %c0_83 = arith.constant 0 : index
    %c0_84 = arith.constant 0 : index
    %c0_85 = arith.constant 0 : index
    %118 = vector.load %arg15[%c0_83, %c0_84, %c0_85] : memref<1x1x32xf32, #tpu.memory_space<vmem>>, vector<1x1x32xf32>
    %119 = vector.shape_cast %118 : vector<1x1x32xf32> to vector<1x32xf32>
    %120 = vector.broadcast %119 : vector<1x32xf32> to vector<2x32xf32>
    %121 = arith.addf %117, %120 : vector<2x32xf32>
    %c0_86 = arith.constant 0 : index
    %c0_87 = arith.constant 0 : index
    %c0_88 = arith.constant 0 : index
    %122 = vector.load %arg12[%c0_86, %c0_87, %c0_88] : memref<1x32x32xf32, #tpu.memory_space<vmem>>, vector<1x32x32xf32>
    %123 = vector.shape_cast %122 : vector<1x32x32xf32> to vector<32x32xf32>
    %cst_89 = arith.constant dense<0.000000e+00> : vector<2x32xf32>
    %124 = tpu.matmul %82, %123, %cst_89 {dimension_numbers = #tpu.dot_dimension_numbers<[1], [0], [0], [1], [0, 0, 1, 1], [], []>} : vector<2x32xf32>, vector<32x32xf32>, vector<2x32xf32> -> vector<2x32xf32>
    %c0_90 = arith.constant 0 : index
    %c0_91 = arith.constant 0 : index
    %c0_92 = arith.constant 0 : index
    %125 = vector.load %arg16[%c0_90, %c0_91, %c0_92] : memref<1x1x32xf32, #tpu.memory_space<vmem>>, vector<1x1x32xf32>
    %126 = vector.shape_cast %125 : vector<1x1x32xf32> to vector<1x32xf32>
    %127 = vector.broadcast %126 : vector<1x32xf32> to vector<2x32xf32>
    %128 = arith.addf %124, %127 : vector<2x32xf32>
    %129 = arith.mulf %98, %128 : vector<2x32xf32>
    %130 = arith.addf %121, %129 : vector<2x32xf32>
    %131 = math.tanh %130 : vector<2x32xf32>
    %cst_93 = arith.constant 1.000000e+00 : f32
    %132 = vector.broadcast %cst_93 : f32 to vector<2x32xf32>
    %133 = arith.subf %132, %114 : vector<2x32xf32>
    %134 = arith.mulf %133, %131 : vector<2x32xf32>
    %135 = arith.mulf %114, %82 : vector<2x32xf32>
    %136 = arith.addf %134, %135 : vector<2x32xf32>
    %c0_94 = arith.constant 0 : index
    %c0_95 = arith.constant 0 : index
    %c0_96 = arith.constant 0 : index
    %137 = vector.load %arg17[%c0_94, %c0_95, %c0_96] : memref<1x32x9xf32, #tpu.memory_space<vmem>>, vector<1x32x9xf32>
    %138 = vector.shape_cast %137 : vector<1x32x9xf32> to vector<32x9xf32>
    %cst_97 = arith.constant dense<0.000000e+00> : vector<2x9xf32>
    %139 = tpu.matmul %136, %138, %cst_97 {dimension_numbers = #tpu.dot_dimension_numbers<[1], [0], [0], [1], [0, 0, 1, 1], [], []>} : vector<2x32xf32>, vector<32x9xf32>, vector<2x9xf32> -> vector<2x9xf32>
    %c0_98 = arith.constant 0 : index
    %c0_99 = arith.constant 0 : index
    %c0_100 = arith.constant 0 : index
    %140 = vector.load %arg18[%c0_98, %c0_99, %c0_100] : memref<1x1x9xf32, #tpu.memory_space<vmem>>, vector<1x1x9xf32>
    %141 = vector.shape_cast %140 : vector<1x1x9xf32> to vector<1x9xf32>
    %142 = vector.broadcast %141 : vector<1x9xf32> to vector<2x9xf32>
    %143 = arith.addf %139, %142 : vector<2x9xf32>
    %c0_101 = arith.constant 0 : index
    %c0_102 = arith.constant 0 : index
    %c0_103 = arith.constant 0 : index
    %144 = vector.load %arg19[%c0_101, %c0_102, %c0_103] : memref<1x2x9xf32, #tpu.memory_space<vmem>>, vector<1x2x9xf32>
    %145 = vector.shape_cast %144 : vector<1x2x9xf32> to vector<2x9xf32>
    %146 = vector.shape_cast %143 : vector<2x9xf32> to vector<1x2x9xf32>
    tpu.vector_store %arg19[%c0_101, %c0_102, %c0_103], %146 {strides = array<i32>} : memref<1x2x9xf32, #tpu.memory_space<vmem>>, vector<1x2x9xf32>,
    %c0_104 = arith.constant 0 : index
    %c0_105 = arith.constant 0 : index
    %c0_106 = arith.constant 0 : index
    %147 = vector.load %arg20[%c0_104, %c0_105, %c0_106] : memref<1x2x32xf32, #tpu.memory_space<vmem>>, vector<1x2x32xf32>
    %148 = vector.shape_cast %147 : vector<1x2x32xf32> to vector<2x32xf32>
    %149 = vector.shape_cast %136 : vector<2x32xf32> to vector<1x2x32xf32>
    tpu.vector_store %arg20[%c0_104, %c0_105, %c0_106], %149 {strides = array<i32>} : memref<1x2x32xf32, #tpu.memory_space<vmem>>, vector<1x2x32xf32>,
    return
  }
  func.func @transform_0(%arg0: i32) -> (i32, i32, i32) {
    %c0_i32 = arith.constant 0 : i32
    %c0_i32_0 = arith.constant 0 : i32
    %c0_i32_1 = arith.constant 0 : i32
    %c0_i32_2 = arith.constant 0 : i32
    return %c0_i32, %c0_i32_0, %c0_i32_1 : i32, i32, i32
  }
  func.func @transform_1(%arg0: i32) -> (i32, i32, i32) {
    %c0_i32 = arith.constant 0 : i32
    %c0_i32_0 = arith.constant 0 : i32
    %c0_i32_1 = arith.constant 0 : i32
    return %arg0, %c0_i32, %c0_i32_0 : i32, i32, i32
  }
  func.func @transform_2(%arg0: i32) -> (i32, i32, i32) {
    %c0_i32 = arith.constant 0 : i32
    %c0_i32_0 = arith.constant 0 : i32
    %c0_i32_1 = arith.constant 0 : i32
    return %arg0, %c0_i32, %c0_i32_0 : i32, i32, i32
  }
  func.func @transform_3(%arg0: i32) -> (i32, i32, i32) {
    %c0_i32 = arith.constant 0 : i32
    %c0_i32_0 = arith.constant 0 : i32
    %c0_i32_1 = arith.constant 0 : i32
    return %arg0, %c0_i32, %c0_i32_0 : i32, i32, i32
  }
  func.func @transform_4(%arg0: i32) -> (i32, i32, i32, i32) {
    %c0_i32 = arith.constant 0 : i32
    %c0_i32_0 = arith.constant 0 : i32
    %c0_i32_1 = arith.constant 0 : i32
    %c0_i32_2 = arith.constant 0 : i32
    return %arg0, %c0_i32, %c0_i32_0, %c0_i32_1 : i32, i32, i32, i32
  }
  func.func @transform_5(%arg0: i32) -> (i32, i32, i32) {
    %c0_i32 = arith.constant 0 : i32
    %c0_i32_0 = arith.constant 0 : i32
    %c0_i32_1 = arith.constant 0 : i32
    return %arg0, %c0_i32, %c0_i32_0 : i32, i32, i32
  }
  func.func @transform_6(%arg0: i32) -> (i32, i32, i32) {
    %c0_i32 = arith.constant 0 : i32
    %c0_i32_0 = arith.constant 0 : i32
    %c0_i32_1 = arith.constant 0 : i32
    return %arg0, %c0_i32, %c0_i32_0 : i32, i32, i32
  }
  func.func @transform_7(%arg0: i32) -> (i32, i32, i32) {
    %c0_i32 = arith.constant 0 : i32
    %c0_i32_0 = arith.constant 0 : i32
    %c0_i32_1 = arith.constant 0 : i32
    return %arg0, %c0_i32, %c0_i32_0 : i32, i32, i32
  }
  func.func @transform_8(%arg0: i32) -> (i32, i32, i32) {
    %c0_i32 = arith.constant 0 : i32
    %c0_i32_0 = arith.constant 0 : i32
    %c0_i32_1 = arith.constant 0 : i32
    return %arg0, %c0_i32, %c0_i32_0 : i32, i32, i32
  }
  func.func @transform_9(%arg0: i32) -> (i32, i32, i32) {
    %c0_i32 = arith.constant 0 : i32
    %c0_i32_0 = arith.constant 0 : i32
    %c0_i32_1 = arith.constant 0 : i32
    return %arg0, %c0_i32, %c0_i32_0 : i32, i32, i32
  }
  func.func @transform_10(%arg0: i32) -> (i32, i32, i32) {
    %c0_i32 = arith.constant 0 : i32
    %c0_i32_0 = arith.constant 0 : i32
    %c0_i32_1 = arith.constant 0 : i32
    return %arg0, %c0_i32, %c0_i32_0 : i32, i32, i32
  }
  func.func @transform_11(%arg0: i32) -> (i32, i32, i32) {
    %c0_i32 = arith.constant 0 : i32
    %c0_i32_0 = arith.constant 0 : i32
    %c0_i32_1 = arith.constant 0 : i32
    return %arg0, %c0_i32, %c0_i32_0 : i32, i32, i32
  }
  func.func @transform_12(%arg0: i32) -> (i32, i32, i32) {
    %c0_i32 = arith.constant 0 : i32
    %c0_i32_0 = arith.constant 0 : i32
    %c0_i32_1 = arith.constant 0 : i32
    return %arg0, %c0_i32, %c0_i32_0 : i32, i32, i32
  }
  func.func @transform_13(%arg0: i32) -> (i32, i32, i32) {
    %c0_i32 = arith.constant 0 : i32
    %c0_i32_0 = arith.constant 0 : i32
    %c0_i32_1 = arith.constant 0 : i32
    return %arg0, %c0_i32, %c0_i32_0 : i32, i32, i32
  }
  func.func @transform_14(%arg0: i32) -> (i32, i32, i32) {
    %c0_i32 = arith.constant 0 : i32
    %c0_i32_0 = arith.constant 0 : i32
    %c0_i32_1 = arith.constant 0 : i32
    return %arg0, %c0_i32, %c0_i32_0 : i32, i32, i32
  }
  func.func @transform_15(%arg0: i32) -> (i32, i32, i32) {
    %c0_i32 = arith.constant 0 : i32
    %c0_i32_0 = arith.constant 0 : i32
    %c0_i32_1 = arith.constant 0 : i32
    return %arg0, %c0_i32, %c0_i32_0 : i32, i32, i32
  }
  func.func @transform_16(%arg0: i32) -> (i32, i32, i32) {
    %c0_i32 = arith.constant 0 : i32
    %c0_i32_0 = arith.constant 0 : i32
    %c0_i32_1 = arith.constant 0 : i32
    return %arg0, %c0_i32, %c0_i32_0 : i32, i32, i32
  }
  func.func @transform_17(%arg0: i32) -> (i32, i32, i32) {
    %c0_i32 = arith.constant 0 : i32
    %c0_i32_0 = arith.constant 0 : i32
    %c0_i32_1 = arith.constant 0 : i32
    return %arg0, %c0_i32, %c0_i32_0 : i32, i32, i32
  }
  func.func @transform_18(%arg0: i32) -> (i32, i32, i32) {
    %c0_i32 = arith.constant 0 : i32
    %c0_i32_0 = arith.constant 0 : i32
    %c0_i32_1 = arith.constant 0 : i32
    return %arg0, %c0_i32, %c0_i32_0 : i32, i32, i32
  }
  func.func @transform_19(%arg0: i32) -> (i32, i32, i32) {
    %c0_i32 = arith.constant 0 : i32
    %c0_i32_0 = arith.constant 0 : i32
    %c0_i32_1 = arith.constant 0 : i32
    return %arg0, %c0_i32, %c0_i32_0 : i32, i32, i32
  }
}

</mosaic_0001>

<bundles_post_ra>
// kernel: kickstarter_forward.1
= control target key start
LH: loop header
LB: loop body
LE: loop exit
PB: predicated region body
PF: predicated region fallthrough
CT: control target
= control target key end

     0   :  { %s4548_s0 = inlined_call_operand.vmem [shape: f32[2,40,256], index: 0, kind: input, shape index: {}]   ;;  %s4549_s1 = inlined_call_operand.vmem [shape: f32[2,2,32], index: 1, kind: input, shape index: {}]   ;;  %s4550_s2 = inlined_call_operand.vmem [shape: f32[2,8,40], index: 2, kind: input, shape index: {}]   ;;  %s4551_s3 = inlined_call_operand.vmem [shape: f32[2,8,1], index: 3, kind: input, shape index: {}]   ;;  %s4552_s4 = inlined_call_operand.vmem [shape: f32[2,8,256,32], index: 4, kind: input, shape index: {}]   ;;  %s4553_s5 = inlined_call_operand.vmem [shape: f32[2,1,32], index: 5, kind: input, shape index: {}]   ;;  %s4554_s6 = inlined_call_operand.vmem [shape: f32[2,32,32], index: 6, kind: input, shape index: {}]   ;;  %s4555_s7 = inlined_call_operand.vmem [shape: f32[2,32,32], index: 7, kind: input, shape index: {}]   ;;  %s4556_s8 = inlined_call_operand.vmem [shape: f32[2,32,32], index: 8, kind: input, shape index: {}]   ;;  %s4557_s9 = inlined_call_operand.vmem [shape: f32[2,32,32], index: 9, kind: input, shape index: {}]   ;;  %s4558_s10 = inlined_call_operand.vmem [shape: f32[2,32,32], index: 10, kind: input, shape index: {}]   ;;  %s4559_s11 = inlined_call_operand.vmem [shape: f32[2,32,32], index: 11, kind: input, shape index: {}]   ;;  %s4560_s12 = inlined_call_operand.vmem [shape: f32[2,1,32], index: 12, kind: input, shape index: {}]   ;;  %s4561_s13 = inlined_call_operand.vmem [shape: f32[2,1,32], index: 13, kind: input, shape index: {}]   ;;  %s4562_s14 = inlined_call_operand.vmem [shape: f32[2,1,32], index: 14, kind: input, shape index: {}]   ;;  %s4563_s15 = inlined_call_operand.vmem [shape: f32[2,1,32], index: 15, kind: input, shape index: {}]   ;;  %s4564_s16 = inlined_call_operand.vmem [shape: f32[2,32,9], index: 16, kind: input, shape index: {}]   ;;  %s4565_s17 = inlined_call_operand.vmem [shape: f32[2,1,9], index: 17, kind: input, shape index: {}]   ;;  %s4566_s18 = inlined_call_operand.vmem [shape: f32[2,2,9], index: 18, kind: output, shape index: {0}]   ;;  %s4567_s19 = inlined_call_operand.vmem [shape: f32[2,2,32], index: 19, kind: output, shape index: {1}]  }
   0x1   :  { %4570 = sst [smem:[#allocation3_spill]] %s4548_s0  ;;  %s3955_s0 = smov 0  }
   0x2   :  { %4571 = sst [smem:[#allocation4_spill]] %s4549_s1 }
   0x3   :  { %4572 = sst [smem:[#allocation5_spill]] %s4550_s2 }
   0x4   :  { %4573 = sst [smem:[#allocation6_spill]] %s4551_s3 }
   0x5   :  { %4574 = sst [smem:[#allocation7_spill]] %s4566_s18 }
   0x6 LB: > { %4575 = sst [smem:[#allocation2_spill]] %s3849_s0  ;;  %s2827_s30 = sadd.s32 4294967295, %s3849_s0   ;;  %s3849_s0 = sphi %s3955_s0, %s30_s0  }
   0x7   : > { %p2831_p0 = scmp.ge.s32.totalorder %s3849_s0, 1  ;;  %p685_p1 = scmp.lt.s32.totalorder %s3849_s0, 3 }
   0x9   : > { %p686_p2 = pnand %p2831_p0, %p685_p1 }
   0xa   : > { %s4576_s1 = sld [smem:[#allocation3_spill]] (!%p686_p2)  ;;  %p809_p3 = scmp.lt.s32.totalorder (!%p686_p2), %s2827_s30, 1  ;;  %v3851_v7 = vmov (!%p686_p2), 0.0   ;;  %v3852_v13 = vmov (!%p686_p2), 0   ;;  %vm904_vm0 = vcmask (!%p686_p2), 326656   ;;  %vm1071_vm1 = vcmask (!%p686_p2), 1040384  }
   0xb   : > { %689 = sbr.rel (%p686_p2) target bundleno = 1046 (0x416), region = 92  ;;  %972 = vmatprep.mubr.f32.mxu0 (!%p686_p2), %v3851_v7  ;;  %1056 = vmatprep.mubr.f32.mxu1 (!%p686_p2), %v3851_v7  ;;  %s4577_s20 = sld [smem:[#allocation5_spill]] (!%p686_p2)  ;;  %vm3854_vm2 = vmmov (!%p686_p2), 0   ;;  %vm1989_vm3 = vcmask (!%p686_p2), 261120   ;;  %vm2567_vm4 = vcmask (!%p686_p2), 254976   ;;  %vm2565_vm5 = vcmask (!%p686_p2), 66560  }
   0xc   : > { %3832 = vset.pattern.permute.xlu0 (!%p686_p2), %v3852_v13  ;;  %s4579_s28 = sld [smem:[#allocation4_spill]] (!%p686_p2) }
  0x10   : > { %v890_v0 = vld [vmem:[%s4576_s1 + $0x8] sm:$0xff] (!%p686_p2)  ;;  %v892_v1 = vld [vmem:[%s4576_s1 + $0x18] sm:$0xff] (!%p686_p2)  ;;  %v889_v5 = vld [vmem:[%s4576_s1] sm:$0xff] (!%p686_p2) }
  0x11   : > { %v2855_v2 = vld [vmem:[%s4576_s1 + $0x58] sm:$0xff] (!%p686_p2)  ;;  %v3506_v3 = vpack.c.bf16 (!%p686_p2), %v892_v1, %v890_v0  ;;  %v2857_v4 = vld [vmem:[%s4576_s1 + $0x68] sm:$0xff] (!%p686_p2)  ;;  %v891_v6 = vld [vmem:[%s4576_s1 + $0x10] sm:$0xff] (!%p686_p2) }
  0x12   : > { %v3514_v8 = vpack.c.bf16 %v2857_v4, %v2855_v2  ;;  %v3508_v9 = vpack.c.bf16 %v891_v6, %v889_v5  ;;  %v2854_v10 = vld [vmem:[%s4576_s1 + $0x50] sm:$0xff]  ;;  %v2856_v11 = vld [vmem:[%s4576_s1 + $0x60] sm:$0xff]  ;;  %v894_v12 = vld [vmem:[%s4576_s1 + $0x28] sm:$0xff]  ;;  %s4583_s30 = smov (!%p809_p3, %s2827_s30), 1 }
  0x13   : > { %3507 = vmatprep.subr.bf16.mxu0 %v3506_v3  ;;  %v3516_v14 = vpack.c.bf16 %v2856_v11, %v2854_v10  ;;  %v896_v15 = vld [vmem:[%s4576_s1 + $0x38] sm:$0xff]  ;;  %v2861_v17 = vld [vmem:[%s4576_s1 + $0x88] sm:$0xff]  ;;  %v893_v20 = vld [vmem:[%s4576_s1 + $0x20] sm:$0xff]  ;;  %s2833_s25 = sshll.u32 %s4583_s30, 3  ;;  %s3106_s3 = sshll.u32 %s4583_s30, 11 }
  0x14   : > { %v2859_v16 = vld [vmem:[%s4576_s1 + $0x78] sm:$0xff]  ;;  %3515 = vmatprep.subr.bf16.mxu1 %v3514_v8  ;;  %3509 = vmatpush1.bf16.msra.mxu0 %v3508_v9  ;;  %v3510_v18 = vpack.c.bf16 %v896_v15, %v894_v12  ;;  %v895_v21 = vld [vmem:[%s4576_s1 + $0x30] sm:$0xff]  ;;  %v2860_v24 = vld [vmem:[%s4576_s1 + $0x80] sm:$0xff]  ;;  %s816_s21 = scalar_lea.vmem %s4577_s20, %s2833_s25  ;;  %s4023_s22 = scalar_lea.vmem %s4552_s4, %s3106_s3 }
  0x15   : > { %v3518_v19 = vpack.c.bf16 %v2861_v17, %v2859_v16  ;;  %v2858_v22 = vld [vmem:[%s4576_s1 + $0x70] sm:$0xff]  ;;  %3517 = vmatpush1.bf16.msra.mxu1 %v3516_v14  ;;  %v3512_v23 = vpack.c.bf16 %v895_v21, %v893_v20  ;;  %v898_v26 = vld [vmem:[%s4576_s1 + $0x48] sm:$0xff]  ;;  %v2863_v27 = vld [vmem:[%s4576_s1 + $0x98] sm:$0xff]  ;;  %s4578_s3 = sld [smem:[#allocation6_spill]]  ;;  %s4448_s24 = sshll.u32 %s4583_s30, 1 }
  0x16   : > { %3511 = vmatprep.subr.bf16.mxu0 %v3510_v18  ;;  %v3520_v25 = vpack.c.bf16 %v2860_v24, %v2858_v22  ;;  %v897_v28 = vld [vmem:[%s4576_s1 + $0x40] sm:$0xff]  ;;  %v2882_v31 = vld [vmem:[%s4023_s22 + $0x188] sm:$0xff]  ;;  %v2862_v32 = vld [vmem:[%s4576_s1 + $0x90] sm:$0xff]  ;;  %s812_s29 = scalar_lea.vmem %s4579_s28, %s4448_s24  ;;  %s864_s28 = scalar_lea.vmem %s4561_s13, %s4583_s30 }
  0x17   : > { %3519 = vmatprep.subr.bf16.mxu1 %v3518_v19  ;;  %v2881_v30 = vld [vmem:[%s4023_s22 + $0x180] sm:$0xff]  ;;  %v1091_v35 = vld [vmem:[%s4023_s22 + $0x88] sm:$0xff]  ;;  %v2883_v41 = vld [vmem:[%s4023_s22 + $0x190] sm:$0xff]  ;;  %s870_s2 = scalar_lea.vmem %s4563_s15, %s4583_s30  ;;  %s4580_s20 = sld [smem:[#allocation7_spill]] }
  0x18   : > { %3513 = vmatpush1.bf16.msra.mxu0 %v3512_v23  ;;  %v887_v33 = vld [vmem:[%s816_s21] sm:$0xff]  ;;  %v2866_v37 = vld [vmem:[%s4023_s22 + $0x108] sm:$0xff]  ;;  %v3522_v40 = vpack.c.bf16 %v2882_v31, %v2881_v30  ;;  %v2884_v42 = vld [vmem:[%s4023_s22 + $0x198] sm:$0xff] }
  0x19   : > { %v1090_v34 = vld [vmem:[%s4023_s22 + $0x80] sm:$0xff]  ;;  %3521 = vmatpush1.bf16.msra.mxu1 %v3520_v25  ;;  %916 = vmatprep.subr.mxu0 %v898_v26  ;;  %v1075_v39 = vld [vmem:[%s4023_s22 + $0x8] sm:$0xff]  ;;  %v1092_v43 = vld [vmem:[%s4023_s22 + $0x90] sm:$0xff]  ;;  %v3526_v48 = vpack.c.bf16 %v2884_v42, %v2883_v41 }
  0x1a   : > { %v2865_v36 = vld [vmem:[%s4023_s22 + $0x100] sm:$0xff]  ;;  %1000 = vmatprep.subr.mxu1 %v2863_v27  ;;  %v3554_v44 = vpack.c.bf16 %v1091_v35, %v1090_v34  ;;  %v1093_v46 = vld [vmem:[%s4023_s22 + $0x98] sm:$0xff]  ;;  %v2867_v49 = vld [vmem:[%s4023_s22 + $0x110] sm:$0xff] }
  0x1b   : > { %s820_s27 = scalar_lea.vmem %s4578_s3, %s2833_s25  ;;  %v1074_v38 = vld [vmem:[%s4023_s22] sm:$0xff]  ;;  %v3524_v45 = vpack.c.bf16 %v2866_v37, %v2865_v36  ;;  %v2868_v50 = vld [vmem:[%s4023_s22 + $0x118] sm:$0xff]  ;;  %v1076_v51 = vld [vmem:[%s4023_s22 + $0x10] sm:$0xff]  ;;  %v3558_v52 = vpack.c.bf16 %v1093_v46, %v1092_v43  ;;  %s4435_s25 = sshll.u32 %s4583_s30, 5 }
  0x1c   : > { %v888_v29 = vld [vmem:[%s820_s27] sm:$0xff]  ;;  %917 = vmatpush1.msra.mxu0 %v897_v28  ;;  %v3556_v47 = vpack.c.bf16 %v1075_v39, %v1074_v38  ;;  %v1077_v53 = vld [vmem:[%s4023_s22 + $0x18] sm:$0xff]  ;;  %v2886_v55 = vld [vmem:[%s4023_s22 + $0x1a8] sm:$0xff]  ;;  %v3528_v58 = vpack.c.bf16 %v2868_v50, %v2867_v49  ;;  %s848_s23 = scalar_lea.vmem %s4557_s9, %s4435_s25  ;;  %s853_s0 = scalar_lea.vmem %s4558_s10, %s4435_s25 }
  0x1d   : > { %901 = vperm.xlu0 %3832, %v888_v29   ;;  %1001 = vmatpush1.msra.mxu1 %v2862_v32  ;;  %v2885_v54 = vld [vmem:[%s4023_s22 + $0x1a0] sm:$0xff]  ;;  %v1095_v57 = vld [vmem:[%s4023_s22 + $0xa8] sm:$0xff]  ;;  %v3560_v59 = vpack.c.bf16 %v1077_v53, %v1076_v51  ;;  %v2887_v2 = vld [vmem:[%s4023_s22 + $0x1b0] sm:$0xff]  ;;  %s833_s21 = scalar_lea.vmem %s4554_s6, %s4435_s25  ;;  %s843_s26 = scalar_lea.vmem %s4556_s8, %s4435_s25 }
  0x1e   : > { %2853 = vmatmul.mubr.msk.f32.vlgmr.msra.gmra.mrb[0].mxu0 %vm904_vm0, %v887_v33  ;;  %2864 = vmatmul.mubr.msk.f32.vlgmr.msra.gmra.mrb[0].mxu1 %vm904_vm0, %v887_v33  ;;  %v1094_v56 = vld [vmem:[%s4023_s22 + $0xa0] sm:$0xff]  ;;  %v3530_v60 = vpack.c.bf16 %v2886_v55, %v2885_v54  ;;  %v2870_v62 = vld [vmem:[%s4023_s22 + $0x128] sm:$0xff]  ;;  %v2888_v3 = vld [vmem:[%s4023_s22 + $0x1b8] sm:$0xff]  ;;  %s828_s3 = scalar_lea.vmem %s4553_s5, %s4583_s30  ;;  %s878_s27 = scalar_lea.vmem %s4565_s17, %s4583_s30 }
  0x1f   : > { %3523 = vmatprep.subr.bf16.mxu0 %v3522_v40  ;;  %3555 = vmatprep.subr.bf16.mxu1 %v3554_v44  ;;  %v2869_v61 = vld [vmem:[%s4023_s22 + $0x120] sm:$0xff]  ;;  %v3562_v0 = vpack.c.bf16 %v1095_v57, %v1094_v56  ;;  %v1079_v1 = vld [vmem:[%s4023_s22 + $0x28] sm:$0xff]  ;;  %v1096_v4 = vld [vmem:[%s4023_s22 + $0xb0] sm:$0xff]  ;;  %v3534_v9 = vpack.c.bf16 %v2888_v3, %v2887_v2 }
  0x20   : > { %3525 = vmatpush3.bf16.msra.mxu0 %v3524_v45  ;;  %3557 = vmatpush3.bf16.msra.mxu1 %v3556_v47  ;;  %v1078_v63 = vld [vmem:[%s4023_s22 + $0x20] sm:$0xff]  ;;  %v1097_v5 = vld [vmem:[%s4023_s22 + $0xb8] sm:$0xff]  ;;  %v3532_v6 = vpack.c.bf16 %v2870_v62, %v2869_v61  ;;  %v2871_v10 = vld [vmem:[%s4023_s22 + $0x130] sm:$0xff] }
  0x21   : > { %3527 = vmatprep.subr.bf16.mxu0 %v3526_v48  ;;  %3559 = vmatprep.subr.bf16.mxu1 %v3558_v52  ;;  %v3564_v8 = vpack.c.bf16 %v1079_v1, %v1078_v63  ;;  %v2872_v11 = vld [vmem:[%s4023_s22 + $0x138] sm:$0xff]  ;;  %v1080_v12 = vld [vmem:[%s4023_s22 + $0x30] sm:$0xff]  ;;  %v3566_v13 = vpack.c.bf16 %v1097_v5, %v1096_v4  ;;  %v2889_v15 = vld [vmem:[%s4023_s22 + $0x1c0] sm:$0xff] }
  0x22   : > { %v1081_v14 = vld [vmem:[%s4023_s22 + $0x38] sm:$0xff]  ;;  %v2890_v16 = vld [vmem:[%s4023_s22 + $0x1c8] sm:$0xff]  ;;  %v1098_v17 = vld [vmem:[%s4023_s22 + $0xc0] sm:$0xff]  ;;  %v3536_v19 = vpack.c.bf16 %v2872_v11, %v2871_v10 }
  0x23   : > { %v1099_v18 = vld [vmem:[%s4023_s22 + $0xc8] sm:$0xff]  ;;  %v3568_v20 = vpack.c.bf16 %v1081_v14, %v1080_v12  ;;  %v3538_v21 = vpack.c.bf16 %v2890_v16, %v2889_v15  ;;  %v2873_v22 = vld [vmem:[%s4023_s22 + $0x140] sm:$0xff]  ;;  %v2891_v27 = vld [vmem:[%s4023_s22 + $0x1d0] sm:$0xff] }
  0x24   : > { %3529 = vmatpush3.bf16.msra.mxu0 %v3528_v58  ;;  %3561 = vmatpush3.bf16.msra.mxu1 %v3560_v59  ;;  %v2874_v23 = vld [vmem:[%s4023_s22 + $0x148] sm:$0xff]  ;;  %v1082_v24 = vld [vmem:[%s4023_s22 + $0x40] sm:$0xff]  ;;  %v3570_v25 = vpack.c.bf16 %v1099_v18, %v1098_v17  ;;  %v2892_v28 = vld [vmem:[%s4023_s22 + $0x1d8] sm:$0xff] }
  0x25   : > { %3531 = vmatprep.subr.bf16.mxu0 %v3530_v60  ;;  %3563 = vmatprep.subr.bf16.mxu1 %v3562_v0  ;;  %v1083_v26 = vld [vmem:[%s4023_s22 + $0x48] sm:$0xff]  ;;  %v1100_v29 = vld [vmem:[%s4023_s22 + $0xd0] sm:$0xff]  ;;  %v1101_v30 = vld [vmem:[%s4023_s22 + $0xd8] sm:$0xff]  ;;  %v3540_v31 = vpack.c.bf16 %v2874_v23, %v2873_v22  ;;  %v3542_v33 = vpack.c.bf16 %v2892_v28, %v2891_v27 }
  0x26   : > { %v3572_v32 = vpack.c.bf16 %v1083_v26, %v1082_v24  ;;  %v2875_v34 = vld [vmem:[%s4023_s22 + $0x150] sm:$0xff]  ;;  %v2876_v35 = vld [vmem:[%s4023_s22 + $0x158] sm:$0xff]  ;;  %v3574_v36 = vpack.c.bf16 %v1101_v30, %v1100_v29  ;;  %v2893_v41 = vld [vmem:[%s4023_s22 + $0x1e0] sm:$0xff] }
  0x27   : > { %v1084_v37 = vld [vmem:[%s4023_s22 + $0x50] sm:$0xff]  ;;  %v1085_v38 = vld [vmem:[%s4023_s22 + $0x58] sm:$0xff]  ;;  %v3544_v39 = vpack.c.bf16 %v2876_v35, %v2875_v34  ;;  %v2894_v42 = vld [vmem:[%s4023_s22 + $0x1e8] sm:$0xff] }
  0x28   : > { %3533 = vmatpush3.bf16.msra.mxu0 %v3532_v6  ;;  %3565 = vmatpush3.bf16.msra.mxu1 %v3564_v8  ;;  %v3576_v40 = vpack.c.bf16 %v1085_v38, %v1084_v37  ;;  %v1102_v43 = vld [vmem:[%s4023_s22 + $0xe0] sm:$0xff]  ;;  %v3546_v44 = vpack.c.bf16 %v2894_v42, %v2893_v41  ;;  %v1103_v45 = vld [vmem:[%s4023_s22 + $0xe8] sm:$0xff]  ;;  %v2895_v53 = vld [vmem:[%s4023_s22 + $0x1f0] sm:$0xff] }
  0x29   : > { %3535 = vmatprep.subr.bf16.mxu0 %v3534_v9  ;;  %3567 = vmatprep.subr.bf16.mxu1 %v3566_v13  ;;  %v2877_v46 = vld [vmem:[%s4023_s22 + $0x160] sm:$0xff]  ;;  %v2878_v47 = vld [vmem:[%s4023_s22 + $0x168] sm:$0xff]  ;;  %v3578_v48 = vpack.c.bf16 %v1103_v45, %v1102_v43  ;;  %v2896_v54 = vld [vmem:[%s4023_s22 + $0x1f8] sm:$0xff] }
  0x2a   : > { %v3548_v49 = vpack.c.bf16 %v2878_v47, %v2877_v46  ;;  %v1086_v50 = vld [vmem:[%s4023_s22 + $0x60] sm:$0xff]  ;;  %v1087_v51 = vld [vmem:[%s4023_s22 + $0x68] sm:$0xff]  ;;  %v1104_v55 = vld [vmem:[%s4023_s22 + $0xf0] sm:$0xff]  ;;  %v3550_v56 = vpack.c.bf16 %v2896_v54, %v2895_v53 }
  0x2b   : > { %v3580_v52 = vpack.c.bf16 %v1087_v51, %v1086_v50  ;;  %v1105_v57 = vld [vmem:[%s4023_s22 + $0xf8] sm:$0xff]  ;;  %v2879_v58 = vld [vmem:[%s4023_s22 + $0x170] sm:$0xff]  ;;  %v2913_v1 = vld [vmem:[%s4023_s22 + $0x280] sm:$0xff] }
  0x2c   : > { %3537 = vmatpush3.bf16.msra.mxu0 %v3536_v19  ;;  %3569 = vmatpush3.bf16.msra.mxu1 %v3568_v20  ;;  %v2880_v59 = vld [vmem:[%s4023_s22 + $0x178] sm:$0xff]  ;;  %v3582_v60 = vpack.c.bf16 %v1105_v57, %v1104_v55  ;;  %v1088_v62 = vld [vmem:[%s4023_s22 + $0x70] sm:$0xff]  ;;  %v2914_v2 = vld [vmem:[%s4023_s22 + $0x288] sm:$0xff] }
  0x2d   : > { %3539 = vmatprep.subr.bf16.mxu0 %v3538_v21  ;;  %3571 = vmatprep.subr.bf16.mxu1 %v3570_v25  ;;  %v3552_v61 = vpack.c.bf16 %v2880_v59, %v2879_v58  ;;  %v1089_v63 = vld [vmem:[%s4023_s22 + $0x78] sm:$0xff]  ;;  %v2945_v3 = vld [vmem:[%s4023_s22 + $0x380] sm:$0xff]  ;;  %v3586_v4 = vpack.c.bf16 %v2914_v2, %v2913_v1  ;;  %v2946_v5 = vld [vmem:[%s4023_s22 + $0x388] sm:$0xff] }
  0x2e   : > { %v3584_v0 = vpack.c.bf16 %v1089_v63, %v1088_v62  ;;  %v3618_v6 = vpack.c.bf16 %v2946_v5, %v2945_v3  ;;  %v4111_v8 = vld [vmem:[%s4023_s22 + $0x200] sm:$0xff]  ;;  %v4114_v9 = vld [vmem:[%s4023_s22 + $0x208] sm:$0xff]  ;;  %v4123_v13 = vld [vmem:[%s4023_s22 + $0x290] sm:$0xff] }
  0x2f   : > { %v4117_v10 = vld [vmem:[%s4023_s22 + $0x300] sm:$0xff]  ;;  %v4120_v11 = vld [vmem:[%s4023_s22 + $0x308] sm:$0xff]  ;;  %v4126_v14 = vld [vmem:[%s4023_s22 + $0x298] sm:$0xff]  ;;  %v3588_v26 = vpack.c.bf16 %v4114_v9, %v4111_v8 }
  0x30   : > { %3541 = vmatpush3.bf16.msra.mxu0 %v3540_v31  ;;  %3573 = vmatpush3.bf16.msra.mxu1 %v3572_v32  ;;  %v4129_v15 = vld [vmem:[%s4023_s22 + $0x390] sm:$0xff]  ;;  %v4132_v16 = vld [vmem:[%s4023_s22 + $0x398] sm:$0xff]  ;;  %v4147_v22 = vld [vmem:[%s4023_s22 + $0x2a0] sm:$0xff]  ;;  %v3620_v27 = vpack.c.bf16 %v4120_v11, %v4117_v10  ;;  %v3590_v34 = vpack.c.bf16 %v4126_v14, %v4123_v13 }
  0x31   : > { %3543 = vmatprep.subr.bf16.mxu0 %v3542_v33  ;;  %3575 = vmatprep.subr.bf16.mxu1 %v3574_v36  ;;  %v4135_v17 = vld [vmem:[%s4023_s22 + $0x210] sm:$0xff]  ;;  %v4138_v18 = vld [vmem:[%s4023_s22 + $0x218] sm:$0xff]  ;;  %v4154_v28 = vld [vmem:[%s4023_s22 + $0x2a8] sm:$0xff]  ;;  %v3622_v35 = vpack.c.bf16 %v4132_v16, %v4129_v15 }
  0x32   : > { %v4141_v20 = vld [vmem:[%s4023_s22 + $0x310] sm:$0xff]  ;;  %v4144_v21 = vld [vmem:[%s4023_s22 + $0x318] sm:$0xff]  ;;  %v4157_v29 = vld [vmem:[%s4023_s22 + $0x3a0] sm:$0xff]  ;;  %v3592_v38 = vpack.c.bf16 %v4138_v18, %v4135_v17  ;;  %v3594_v42 = vpack.c.bf16 %v4154_v28, %v4147_v22 }
  0x33   : > { %v4160_v30 = vld [vmem:[%s4023_s22 + $0x3a8] sm:$0xff]  ;;  %v2901_v9 = vld [vmem:[%s4023_s22 + $0x220] sm:$0xff] }
  0x34   : > { %3545 = vmatpush3.bf16.msra.mxu0 %v3544_v39  ;;  %3577 = vmatpush3.bf16.msra.mxu1 %v3576_v40  ;;  %v3624_v39 = vpack.c.bf16 %v4144_v21, %v4141_v20  ;;  %v3626_v43 = vpack.c.bf16 %v4160_v30, %v4157_v29  ;;  %v2902_v10 = vld [vmem:[%s4023_s22 + $0x228] sm:$0xff]  ;;  %v2933_v11 = vld [vmem:[%s4023_s22 + $0x320] sm:$0xff]  ;;  %v2936_v21 = vld [vmem:[%s4023_s22 + $0x338] sm:$0xff] }
  0x35   : > { %3547 = vmatprep.subr.bf16.mxu0 %v3546_v44  ;;  %3579 = vmatprep.subr.bf16.mxu1 %v3578_v48  ;;  %v2934_v16 = vld [vmem:[%s4023_s22 + $0x328] sm:$0xff] }
  0x36   : > { %v3628_v17 = vpack.c.bf16 %v2934_v16, %v2933_v11  ;;  %v2922_v22 = vld [vmem:[%s4023_s22 + $0x2c8] sm:$0xff] }
  0x38   : > { %3549 = vmatpush3.bf16.msra.mxu0 %v3548_v49  ;;  %3581 = vmatpush3.bf16.msra.mxu1 %v3580_v52 }
  0x39   : > { %3551 = vmatprep.subr.bf16.mxu0 %v3550_v56  ;;  %3583 = vmatprep.subr.bf16.mxu1 %v3582_v60 }
  0x3c   : > { %3553 = vmatpush3.bf16.msra.mxu0 %v3552_v61  ;;  %3585 = vmatpush3.bf16.msra.mxu1 %v3584_v0 }
  0x3d   : > { %3587 = vmatprep.subr.bf16.mxu0 %v3586_v4  ;;  %3619 = vmatprep.subr.bf16.mxu1 %v3618_v6 }
  0x9c   : > { %v902_v12 = vpop.permute.xlu0 %901 }
  0xf1   : > { %v974_v19 = vpop.f32.mrb[0].mxu0  ;;  %v1058_v24 = vpop.f32.mrb[0].mxu1 }
  0xf2   : > { %v975_v23 = vadd.f32 %v974_v19, %v902_v12  ;;  %v976_v25 = vpop.f32.mrb[1].mxu0  ;;  %v1059_v31 = vadd.f32 %v1058_v24, %v902_v12  ;;  %v1060_v33 = vpop.f32.mrb[1].mxu1  ;;  %v2919_v19 = vld [vmem:[%s4023_s22 + $0x2b0] sm:$0xff] }
  0xf3   : > { %v977_v32 = vadd.f32 %v976_v25, %v902_v12  ;;  %v1061_v37 = vadd.f32 %v1060_v33, %v902_v12 }
  0xf4   : > { %v4166_v36 = vmax.f32 %v975_v23, 0.0  ;;  %v4172_v40 = vmax.f32 %v1059_v31, 0.0  ;;  %v2920_v23 = vld [vmem:[%s4023_s22 + $0x2b8] sm:$0xff]  ;;  %v2951_v31 = vld [vmem:[%s4023_s22 + $0x3b0] sm:$0xff] }
  0xf5   : > { %v4174_v41 = vmax.f32 %v977_v32, 0.0  ;;  %v1064_v44 = vmax.f32 %v1061_v37, 0.0  ;;  %v2952_v32 = vld [vmem:[%s4023_s22 + $0x3b8] sm:$0xff]  ;;  %v3598_v18 = vpack.c.bf16 %v2920_v23, %v2919_v19  ;;  %v2942_v19 = vld [vmem:[%s4023_s22 + $0x368] sm:$0xff]  ;;  %v2927_v23 = vld [vmem:[%s4023_s22 + $0x2f0] sm:$0xff] }
  0xf6   : > { %v1108_v45 = vrot.slane %v4166_v36, 1  ;;  %v1287_v46 = vrot.slane %v4166_v36, 2  ;;  %v1401_v47 = vrot.slane %v4166_v36, 3  ;;  %v1067_v49 = vrot.slane %v4172_v40, 7 }
  0xf7   : > { %v1109_v48 = vrot.slane %v4174_v41, 1  ;;  %v1288_v50 = vrot.slane %v4174_v41, 2  ;;  %v1402_v51 = vrot.slane %v4174_v41, 3  ;;  %v1068_v52 = vrot.slane %v1064_v44, 7 }
  0xf8   : > { %v1112_v53 = vsel %vm1071_vm1, %v1108_v45, %v4172_v40  ;;  %v1292_v54 = vrot.slane %v1064_v44, 1  ;;  %v1406_v55 = vrot.slane %v1064_v44, 2  ;;  %v1072_v57 = vsel %vm1071_vm1, %v4166_v36, %v1067_v49 }
  0xf9   : > { %v1113_v56 = vsel %vm1071_vm1, %v1109_v48, %v1064_v44  ;;  %v1291_v58 = vrot.slane %v4172_v40, 1  ;;  %v1405_v59 = vrot.slane %v4172_v40, 2  ;;  %v1073_v60 = vsel %vm1071_vm1, %v4174_v41, %v1068_v52  ;;  %v2935_v48 = vld [vmem:[%s4023_s22 + $0x330] sm:$0xff] }
  0xfa   : > { %1211 = vmatprep.mubr.f32.mxu0 %v1113_v56  ;;  %v1296_v61 = vsel %vm1071_vm1, %v1288_v50, %v1292_v54  ;;  %v1410_v62 = vsel %vm1071_vm1, %v1402_v51, %v1406_v55  ;;  %v1516_v63 = vrot.slane %v4174_v41, 4  ;;  %1281 = vmatprep.mubr.f32.mxu1 %v1073_v60  ;;  %v1520_v2 = vrot.slane %v1064_v44, 3  ;;  %v2906_v50 = vld [vmem:[%s4023_s22 + $0x248] sm:$0xff]  ;;  %v2937_v51 = vld [vmem:[%s4023_s22 + $0x340] sm:$0xff]  ;;  %v2923_v54 = vld [vmem:[%s4023_s22 + $0x2d0] sm:$0xff] }
  0xfb   : > { %1212 = vmatmul.mubr.f32.vlgmr.msra.gmra.mrb[2].mxu0 %v1112_v53  ;;  %v4200_v0 = vsel %vm1071_vm1, %v1287_v46, %v1291_v58  ;;  %v4203_v1 = vsel %vm1071_vm1, %v1401_v47, %v1405_v59  ;;  %v1630_v3 = vrot.slane %v4174_v41, 5  ;;  %1282 = vmatmul.mubr.f32.vlgmr.msra.gmra.mrb[2].mxu1 %v1072_v57  ;;  %v1634_v4 = vrot.slane %v1064_v44, 4  ;;  %v2904_v47 = vld [vmem:[%s4023_s22 + $0x238] sm:$0xff]  ;;  %v2938_v53 = vld [vmem:[%s4023_s22 + $0x348] sm:$0xff]  ;;  %v2955_v56 = vld [vmem:[%s4023_s22 + $0x3d0] sm:$0xff] }
  0xfc   : > { %3589 = vmatpush3.bf16.msra.mxu0 %v3588_v26  ;;  %v1515_v5 = vrot.slane %v4166_v36, 4  ;;  %v1519_v6 = vrot.slane %v4172_v40, 3  ;;  %v1629_v8 = vrot.slane %v4166_v36, 5  ;;  %3621 = vmatpush3.bf16.msra.mxu1 %v3620_v27  ;;  %v4213_v12 = vsel %vm1071_vm1, %v1516_v63, %v1520_v2  ;;  %v2924_v55 = vld [vmem:[%s4023_s22 + $0x2d8] sm:$0xff]  ;;  %v2939_v63 = vld [vmem:[%s4023_s22 + $0x350] sm:$0xff] }
  0xfd   : > { %1394 = vmatprep.mubr.f32.mxu0 %v1296_v61  ;;  %v1633_v13 = vrot.slane %v4172_v40, 4  ;;  %v1744_v14 = vrot.slane %v4174_v41, 6  ;;  %v1748_v15 = vrot.slane %v1064_v44, 5  ;;  %1508 = vmatprep.mubr.f32.mxu1 %v1410_v62  ;;  %v4221_v24 = vsel %vm1071_vm1, %v1630_v3, %v1634_v4  ;;  %v2956_v57 = vld [vmem:[%s4023_s22 + $0x3d8] sm:$0xff]  ;;  %v2907_v61 = vld [vmem:[%s4023_s22 + $0x250] sm:$0xff]  ;;  %v2925_v4 = vld [vmem:[%s4023_s22 + $0x2e0] sm:$0xff] }
  0xfe   : > { %3591 = vmatprep.subr.bf16.mxu0 %v3590_v34  ;;  %v4224_v25 = vsel %vm1071_vm1, %v1515_v5, %v1519_v6  ;;  %v1858_v26 = vrot.slane %v4174_v41, 7  ;;  %v1862_v27 = vrot.slane %v1064_v44, 6  ;;  %3623 = vmatprep.subr.bf16.mxu1 %v3622_v35  ;;  %v1743_v37 = vrot.slane %v4166_v36, 6  ;;  %v2908_v62 = vld [vmem:[%s4023_s22 + $0x258] sm:$0xff]  ;;  %v2926_v5 = vld [vmem:[%s4023_s22 + $0x2e8] sm:$0xff]  ;;  %v2957_v6 = vld [vmem:[%s4023_s22 + $0x3e0] sm:$0xff] }
  0xff   : > { %v4230_v33 = vsel %vm1071_vm1, %v1629_v8, %v1633_v13  ;;  %v4233_v34 = vsel %vm1071_vm1, %v1744_v14, %v1748_v15  ;;  %v1747_v45 = vrot.slane %v4172_v40, 5  ;;  %v3596_v35 = vpack.c.bf16 %v2902_v10, %v2901_v9  ;;  %v2940_v3 = vld [vmem:[%s4023_s22 + $0x358] sm:$0xff]  ;;  %v2958_v8 = vld [vmem:[%s4023_s22 + $0x3e8] sm:$0xff]  ;;  %v2909_v13 = vld [vmem:[%s4023_s22 + $0x260] sm:$0xff] }
 0x100   : > { %3593 = vmatpush3.bf16.msra.mxu0 %v3592_v38  ;;  %v4241_v41 = vsel %vm1071_vm1, %v1858_v26, %v1862_v27  ;;  %v1857_v44 = vrot.slane %v4166_v36, 7  ;;  %v1861_v46 = vrot.slane %v4172_v40, 6  ;;  %3625 = vmatpush3.bf16.msra.mxu1 %v3624_v39  ;;  %v2903_v38 = vld [vmem:[%s4023_s22 + $0x230] sm:$0xff]  ;;  %v3630_v20 = vpack.c.bf16 %v2952_v32, %v2951_v31  ;;  %v2921_v39 = vld [vmem:[%s4023_s22 + $0x2c0] sm:$0xff]  ;;  %v2910_v14 = vld [vmem:[%s4023_s22 + $0x268] sm:$0xff] }
 0x101   : > { %3595 = vmatprep.subr.bf16.mxu0 %v3594_v42  ;;  %v4255_v36 = vsel %vm1071_vm1, %v1743_v37, %v1747_v45  ;;  %3627 = vmatprep.subr.bf16.mxu1 %v3626_v43  ;;  %v2953_v40 = vld [vmem:[%s4023_s22 + $0x3c0] sm:$0xff]  ;;  %v2954_v42 = vld [vmem:[%s4023_s22 + $0x3c8] sm:$0xff]  ;;  %v3600_v49 = vpack.c.bf16 %v2904_v47, %v2903_v38  ;;  %v3632_v29 = vpack.c.bf16 %v2936_v21, %v2935_v48  ;;  %v2928_v26 = vld [vmem:[%s4023_s22 + $0x2f8] sm:$0xff] }
 0x102   : > { %v4264_v28 = vsel %vm1071_vm1, %v1857_v44, %v1861_v46  ;;  %v3602_v30 = vpack.c.bf16 %v2922_v22, %v2921_v39  ;;  %v2905_v43 = vld [vmem:[%s4023_s22 + $0x240] sm:$0xff]  ;;  %v3634_v52 = vpack.c.bf16 %v2954_v42, %v2953_v40  ;;  %v3636_v59 = vpack.c.bf16 %v2938_v53, %v2937_v51  ;;  %v2959_v27 = vld [vmem:[%s4023_s22 + $0x3f0] sm:$0xff]  ;;  %v2960_v31 = vld [vmem:[%s4023_s22 + $0x3f8] sm:$0xff] }
 0x103   : > { %v3604_v58 = vpack.c.bf16 %v2906_v50, %v2905_v43  ;;  %v3606_v60 = vpack.c.bf16 %v2924_v55, %v2923_v54  ;;  %v3638_v2 = vpack.c.bf16 %v2956_v57, %v2955_v56  ;;  %v3608_v9 = vpack.c.bf16 %v2908_v62, %v2907_v61  ;;  %v2941_v15 = vld [vmem:[%s4023_s22 + $0x360] sm:$0xff]  ;;  %v2912_v44 = vld [vmem:[%s4023_s22 + $0x278] sm:$0xff]  ;;  %v2943_v46 = vld [vmem:[%s4023_s22 + $0x370] sm:$0xff] }
 0x104   : > { %3597 = vmatpush3.bf16.msra.mxu0 %v3596_v35  ;;  %3629 = vmatpush3.bf16.msra.mxu1 %v3628_v17  ;;  %v3640_v10 = vpack.c.bf16 %v2940_v3, %v2939_v63  ;;  %v3610_v11 = vpack.c.bf16 %v2926_v5, %v2925_v4  ;;  %v3642_v16 = vpack.c.bf16 %v2958_v8, %v2957_v6  ;;  %v2911_v35 = vld [vmem:[%s4023_s22 + $0x270] sm:$0xff]  ;;  %v2977_v38 = vld [vmem:[%s4023_s22 + $0x480] sm:$0xff]  ;;  %v2978_v47 = vld [vmem:[%s4023_s22 + $0x488] sm:$0xff] }
 0x105   : > { %3599 = vmatprep.subr.bf16.mxu0 %v3598_v18  ;;  %3631 = vmatprep.subr.bf16.mxu1 %v3630_v20  ;;  %v3612_v32 = vpack.c.bf16 %v2910_v14, %v2909_v13  ;;  %v3644_v37 = vpack.c.bf16 %v2942_v19, %v2941_v15  ;;  %v3614_v45 = vpack.c.bf16 %v2928_v26, %v2927_v23  ;;  %v2944_v18 = vld [vmem:[%s4023_s22 + $0x378] sm:$0xff]  ;;  %v3009_v48 = vld [vmem:[%s4023_s22 + $0x580] sm:$0xff]  ;;  %v3010_v20 = vld [vmem:[%s4023_s22 + $0x588] sm:$0xff] }
 0x106   : > { %v3646_v17 = vpack.c.bf16 %v2960_v31, %v2959_v27  ;;  %v3616_v21 = vpack.c.bf16 %v2912_v44, %v2911_v35  ;;  %v3648_v39 = vpack.c.bf16 %v2944_v18, %v2943_v46  ;;  %v3650_v22 = vpack.c.bf16 %v2978_v47, %v2977_v38  ;;  %v2961_v40 = vld [vmem:[%s4023_s22 + $0x400] sm:$0xff]  ;;  %v2962_v42 = vld [vmem:[%s4023_s22 + $0x408] sm:$0xff]  ;;  %v2979_v43 = vld [vmem:[%s4023_s22 + $0x490] sm:$0xff] }
 0x107   : > { %v2980_v50 = vld [vmem:[%s4023_s22 + $0x498] sm:$0xff]  ;;  %v3652_v51 = vpack.c.bf16 %v2962_v42, %v2961_v40  ;;  %v2963_v55 = vld [vmem:[%s4023_s22 + $0x410] sm:$0xff]  ;;  %v2982_v61 = vld [vmem:[%s4023_s22 + $0x4a8] sm:$0xff] }
 0x108   : > { %3601 = vmatpush3.bf16.msra.mxu0 %v3600_v49  ;;  %3633 = vmatpush3.bf16.msra.mxu1 %v3632_v29  ;;  %v3682_v49 = vpack.c.bf16 %v3010_v20, %v3009_v48  ;;  %v2993_v29 = vld [vmem:[%s4023_s22 + $0x500] sm:$0xff]  ;;  %v3012_v53 = vld [vmem:[%s4023_s22 + $0x598] sm:$0xff]  ;;  %v2995_v57 = vld [vmem:[%s4023_s22 + $0x510] sm:$0xff] }
 0x109   : > { %3603 = vmatprep.subr.bf16.mxu0 %v3602_v30  ;;  %3635 = vmatprep.subr.bf16.mxu1 %v3634_v52  ;;  %v2994_v30 = vld [vmem:[%s4023_s22 + $0x508] sm:$0xff]  ;;  %v3011_v52 = vld [vmem:[%s4023_s22 + $0x590] sm:$0xff]  ;;  %v2964_v56 = vld [vmem:[%s4023_s22 + $0x418] sm:$0xff] }
 0x10a   : > { %v3684_v54 = vpack.c.bf16 %v2994_v30, %v2993_v29  ;;  %v3686_v62 = vpack.c.bf16 %v3012_v53, %v3011_v52  ;;  %v3013_v63 = vld [vmem:[%s4023_s22 + $0x5a0] sm:$0xff]  ;;  %v3656_v3 = vpack.c.bf16 %v2964_v56, %v2963_v55  ;;  %v2966_v8 = vld [vmem:[%s4023_s22 + $0x428] sm:$0xff]  ;;  %v3016_v13 = vld [vmem:[%s4023_s22 + $0x5b8] sm:$0xff] }
 0x10b   : > { %v2965_v6 = vld [vmem:[%s4023_s22 + $0x420] sm:$0xff]  ;;  %v2968_v19 = vld [vmem:[%s4023_s22 + $0x438] sm:$0xff]  ;;  %v2999_v23 = vld [vmem:[%s4023_s22 + $0x530] sm:$0xff] }
 0x10c   : > { %3605 = vmatpush3.bf16.msra.mxu0 %v3604_v58  ;;  %3637 = vmatpush3.bf16.msra.mxu1 %v3636_v59  ;;  %v3654_v58 = vpack.c.bf16 %v2980_v50, %v2979_v43  ;;  %v2996_v59 = vld [vmem:[%s4023_s22 + $0x518] sm:$0xff]  ;;  %v3660_v14 = vpack.c.bf16 %v2966_v8, %v2965_v6  ;;  %v2985_v31 = vld [vmem:[%s4023_s22 + $0x4c0] sm:$0xff]  ;;  %v2970_v18 = vld [vmem:[%s4023_s22 + $0x448] sm:$0xff] }
 0x10d   : > { %3607 = vmatprep.subr.bf16.mxu0 %v3606_v60  ;;  %3639 = vmatprep.subr.bf16.mxu1 %v3638_v2  ;;  %v2981_v60 = vld [vmem:[%s4023_s22 + $0x4a0] sm:$0xff]  ;;  %v3014_v2 = vld [vmem:[%s4023_s22 + $0x5a8] sm:$0xff]  ;;  %v3688_v4 = vpack.c.bf16 %v2996_v59, %v2995_v57  ;;  %v3000_v27 = vld [vmem:[%s4023_s22 + $0x538] sm:$0xff] }
 0x10e   : > { %v3658_v5 = vpack.c.bf16 %v2982_v61, %v2981_v60  ;;  %v3696_v44 = vpack.c.bf16 %v3000_v27, %v2999_v23  ;;  %v3001_v38 = vld [vmem:[%s4023_s22 + $0x540] sm:$0xff]  ;;  %v3002_v48 = vld [vmem:[%s4023_s22 + $0x548] sm:$0xff]  ;;  %v2987_v20 = vld [vmem:[%s4023_s22 + $0x4d0] sm:$0xff] }
 0x10f   : > { %v3700_v42 = vpack.c.bf16 %v3002_v48, %v3001_v38  ;;  %v2971_v29 = vld [vmem:[%s4023_s22 + $0x450] sm:$0xff]  ;;  %v2972_v30 = vld [vmem:[%s4023_s22 + $0x458] sm:$0xff]  ;;  %v2989_v52 = vld [vmem:[%s4023_s22 + $0x4e0] sm:$0xff] }
 0x110   : > { %3609 = vmatpush3.bf16.msra.mxu0 %v3608_v9  ;;  %3641 = vmatpush3.bf16.msra.mxu1 %v3640_v10  ;;  %v3690_v9 = vpack.c.bf16 %v3014_v2, %v3013_v63  ;;  %v2983_v10 = vld [vmem:[%s4023_s22 + $0x4b0] sm:$0xff]  ;;  %v2990_v53 = vld [vmem:[%s4023_s22 + $0x4e8] sm:$0xff]  ;;  %v3672_v56 = vpack.c.bf16 %v2972_v30, %v2971_v29  ;;  %v2973_v59 = vld [vmem:[%s4023_s22 + $0x460] sm:$0xff] }
 0x111   : > { %3611 = vmatprep.subr.bf16.mxu0 %v3610_v11  ;;  %3643 = vmatprep.subr.bf16.mxu1 %v3642_v16  ;;  %v2984_v11 = vld [vmem:[%s4023_s22 + $0x4b8] sm:$0xff]  ;;  %v2967_v16 = vld [vmem:[%s4023_s22 + $0x430] sm:$0xff]  ;;  %v3022_v55 = vld [vmem:[%s4023_s22 + $0x5e8] sm:$0xff] }
 0x112   : > { %v3662_v15 = vpack.c.bf16 %v2984_v11, %v2983_v10  ;;  %v3664_v35 = vpack.c.bf16 %v2968_v19, %v2967_v16  ;;  %v3003_v43 = vld [vmem:[%s4023_s22 + $0x550] sm:$0xff]  ;;  %v2974_v60 = vld [vmem:[%s4023_s22 + $0x468] sm:$0xff]  ;;  %v3005_v61 = vld [vmem:[%s4023_s22 + $0x560] sm:$0xff] }
 0x113   : > { %v3006_v63 = vld [vmem:[%s4023_s22 + $0x568] sm:$0xff]  ;;  %v2991_v2 = vld [vmem:[%s4023_s22 + $0x4f0] sm:$0xff]  ;;  %v3676_v6 = vpack.c.bf16 %v2974_v60, %v2973_v59  ;;  %v3032_v59 = vld [vmem:[%s4023_s22 + $0x638] sm:$0xff] }
 0x114   : > { %3613 = vmatpush3.bf16.msra.mxu0 %v3612_v32  ;;  %3645 = vmatpush3.bf16.msra.mxu1 %v3644_v37  ;;  %v2986_v32 = vld [vmem:[%s4023_s22 + $0x4c8] sm:$0xff]  ;;  %v3017_v37 = vld [vmem:[%s4023_s22 + $0x5c0] sm:$0xff]  ;;  %v3708_v8 = vpack.c.bf16 %v3006_v63, %v3005_v61  ;;  %v3007_v10 = vld [vmem:[%s4023_s22 + $0x570] sm:$0xff] }
 0x115   : > { %3615 = vmatprep.subr.bf16.mxu0 %v3614_v45  ;;  %3647 = vmatprep.subr.bf16.mxu1 %v3646_v17  ;;  %v3018_v45 = vld [vmem:[%s4023_s22 + $0x5c8] sm:$0xff]  ;;  %v3666_v46 = vpack.c.bf16 %v2986_v32, %v2985_v31  ;;  %v2969_v17 = vld [vmem:[%s4023_s22 + $0x440] sm:$0xff]  ;;  %v3027_v38 = vld [vmem:[%s4023_s22 + $0x610] sm:$0xff] }
 0x116   : > { %v3698_v47 = vpack.c.bf16 %v3018_v45, %v3017_v37  ;;  %v3668_v40 = vpack.c.bf16 %v2970_v18, %v2969_v17  ;;  %v3026_v27 = vld [vmem:[%s4023_s22 + $0x608] sm:$0xff]  ;;  %v3057_v32 = vld [vmem:[%s4023_s22 + $0x700] sm:$0xff]  ;;  %v3043_v45 = vld [vmem:[%s4023_s22 + $0x690] sm:$0xff] }
 0x117   : > { %v3058_v37 = vld [vmem:[%s4023_s22 + $0x708] sm:$0xff]  ;;  %v3076_v17 = vld [vmem:[%s4023_s22 + $0x798] sm:$0xff]  ;;  %v3059_v48 = vld [vmem:[%s4023_s22 + $0x710] sm:$0xff] }
 0x118   : > { %3617 = vmatpush3.bf16.msra.mxu0 %v3616_v21  ;;  %3649 = vmatpush3.bf16.msra.mxu1 %v3648_v39  ;;  %v2988_v21 = vld [vmem:[%s4023_s22 + $0x4d8] sm:$0xff]  ;;  %v3019_v39 = vld [vmem:[%s4023_s22 + $0x5d0] sm:$0xff]  ;;  %v3748_v18 = vpack.c.bf16 %v3058_v37, %v3057_v32  ;;  %v3049_v63 = vld [vmem:[%s4023_s22 + $0x6c0] sm:$0xff] }
 0x119   : > { %3651 = vmatprep.subr.bf16.mxu0 %v3650_v22  ;;  %3683 = vmatprep.subr.bf16.mxu1 %v3682_v49  ;;  %v3020_v22 = vld [vmem:[%s4023_s22 + $0x5d8] sm:$0xff]  ;;  %v3670_v49 = vpack.c.bf16 %v2988_v21, %v2987_v20  ;;  %v3063_v60 = vld [vmem:[%s4023_s22 + $0x730] sm:$0xff]  ;;  %v3053_v37 = vld [vmem:[%s4023_s22 + $0x6e0] sm:$0xff] }
 0x11a   : > { %v3702_v50 = vpack.c.bf16 %v3020_v22, %v3019_v39  ;;  %v3060_v21 = vld [vmem:[%s4023_s22 + $0x718] sm:$0xff]  ;;  %v3045_v39 = vld [vmem:[%s4023_s22 + $0x6a0] sm:$0xff]  ;;  %v3046_v22 = vld [vmem:[%s4023_s22 + $0x6a8] sm:$0xff] }
 0x11b   : > { %1395 = vmatmul.mubr.f32.vlgmr.msra.gmra.mrb[4].mxu0 %v4200_v0  ;;  %1509 = vmatmul.mubr.f32.vlgmr.msra.gmra.mrb[4].mxu1 %v4203_v1  ;;  %v2997_v0 = vld [vmem:[%s4023_s22 + $0x520] sm:$0xff]  ;;  %v2998_v1 = vld [vmem:[%s4023_s22 + $0x528] sm:$0xff]  ;;  %v3752_v30 = vpack.c.bf16 %v3060_v21, %v3059_v48  ;;  %v3068_v32 = vld [vmem:[%s4023_s22 + $0x758] sm:$0xff] }
 0x11c   : > { %3653 = vmatpush3.bf16.msra.mxu0 %v3652_v51  ;;  %1622 = vmatprep.mubr.f32.mxu0 %v4213_v12  ;;  %v3015_v12 = vld [vmem:[%s4023_s22 + $0x5b0] sm:$0xff]  ;;  %v3004_v51 = vld [vmem:[%s4023_s22 + $0x558] sm:$0xff]  ;;  %v3069_v48 = vld [vmem:[%s4023_s22 + $0x760] sm:$0xff] }
 0x11d   : > { %3685 = vmatpush3.bf16.msra.mxu1 %v3684_v54  ;;  %1736 = vmatprep.mubr.f32.mxu1 %v4221_v24  ;;  %v3692_v24 = vpack.c.bf16 %v2998_v1, %v2997_v0  ;;  %v3694_v26 = vpack.c.bf16 %v3016_v13, %v3015_v12  ;;  %v3021_v54 = vld [vmem:[%s4023_s22 + $0x5e0] sm:$0xff]  ;;  %v3704_v57 = vpack.c.bf16 %v3004_v51, %v3003_v43  ;;  %v2976_v1 = vld [vmem:[%s4023_s22 + $0x478] sm:$0xff]  ;;  %v3030_v51 = vld [vmem:[%s4023_s22 + $0x628] sm:$0xff] }
 0x11e   : > { %3655 = vmatprep.subr.bf16.mxu0 %v3654_v58  ;;  %3687 = vmatprep.subr.bf16.mxu1 %v3686_v62  ;;  %v3674_v58 = vpack.c.bf16 %v2990_v53, %v2989_v52  ;;  %v3706_v62 = vpack.c.bf16 %v3022_v55, %v3021_v54  ;;  %v3008_v12 = vld [vmem:[%s4023_s22 + $0x578] sm:$0xff]  ;;  %v3041_v13 = vld [vmem:[%s4023_s22 + $0x680] sm:$0xff]  ;;  %v3722_v43 = vpack.c.bf16 %v3046_v22, %v3045_v39  ;;  %v3047_v53 = vld [vmem:[%s4023_s22 + $0x6b0] sm:$0xff] }
 0x11f   : > { %v3712_v19 = vpack.c.bf16 %v3008_v12, %v3007_v10  ;;  %v3048_v54 = vld [vmem:[%s4023_s22 + $0x6b8] sm:$0xff]  ;;  %v3051_v12 = vld [vmem:[%s4023_s22 + $0x6d0] sm:$0xff]  ;;  %v3070_v21 = vld [vmem:[%s4023_s22 + $0x768] sm:$0xff] }
 0x120   : > { %3657 = vmatpush3.bf16.msra.mxu0 %v3656_v3  ;;  %v2992_v3 = vld [vmem:[%s4023_s22 + $0x4f8] sm:$0xff]  ;;  %v3055_v39 = vld [vmem:[%s4023_s22 + $0x6f0] sm:$0xff] }
 0x121   : > { %3689 = vmatpush3.bf16.msra.mxu1 %v3688_v4  ;;  %3659 = vmatprep.subr.bf16.mxu0 %v3658_v5  ;;  %v3023_v4 = vld [vmem:[%s4023_s22 + $0x5f0] sm:$0xff]  ;;  %v3024_v5 = vld [vmem:[%s4023_s22 + $0x5f8] sm:$0xff]  ;;  %v3678_v0 = vpack.c.bf16 %v2992_v3, %v2991_v2  ;;  %v3050_v2 = vld [vmem:[%s4023_s22 + $0x6c8] sm:$0xff] }
 0x122   : > { %3691 = vmatprep.subr.bf16.mxu1 %v3690_v9  ;;  %v2975_v9 = vld [vmem:[%s4023_s22 + $0x470] sm:$0xff]  ;;  %v3710_v11 = vpack.c.bf16 %v3024_v5, %v3023_v4  ;;  %v3080_v55 = vld [vmem:[%s4023_s22 + $0x7b8] sm:$0xff]  ;;  %v3081_v3 = vld [vmem:[%s4023_s22 + $0x7c0] sm:$0xff] }
 0x123   : > { %v3680_v16 = vpack.c.bf16 %v2976_v1, %v2975_v9  ;;  %v3082_v4 = vld [vmem:[%s4023_s22 + $0x7c8] sm:$0xff]  ;;  %v3065_v1 = vld [vmem:[%s4023_s22 + $0x740] sm:$0xff]  ;;  %v3056_v22 = vld [vmem:[%s4023_s22 + $0x6f8] sm:$0xff] }
 0x124   : > { %3661 = vmatpush3.bf16.msra.mxu0 %v3660_v14  ;;  %v3042_v14 = vld [vmem:[%s4023_s22 + $0x688] sm:$0xff]  ;;  %v3762_v10 = vpack.c.bf16 %v3082_v4, %v3081_v3  ;;  %v1983_v4 = vld [vmem:[%s833_s21 + $0x10] sm:$0xff] }
 0x125   : > { %3693 = vmatpush3.bf16.msra.mxu1 %v3692_v24  ;;  %3663 = vmatprep.subr.bf16.mxu0 %v3662_v15  ;;  %v3073_v24 = vld [vmem:[%s4023_s22 + $0x780] sm:$0xff]  ;;  %v3074_v15 = vld [vmem:[%s4023_s22 + $0x788] sm:$0xff]  ;;  %v3714_v23 = vpack.c.bf16 %v3042_v14, %v3041_v13  ;;  %v3052_v13 = vld [vmem:[%s4023_s22 + $0x6d8] sm:$0xff] }
 0x126   : > { %3695 = vmatprep.subr.bf16.mxu1 %v3694_v26  ;;  %v3025_v26 = vld [vmem:[%s4023_s22 + $0x600] sm:$0xff]  ;;  %v3746_v31 = vpack.c.bf16 %v3074_v15, %v3073_v24  ;;  %v3034_v9 = vld [vmem:[%s4023_s22 + $0x648] sm:$0xff]  ;;  %v3083_v14 = vld [vmem:[%s4023_s22 + $0x7d0] sm:$0xff] }
 0x127   : > { %v3084_v24 = vld [vmem:[%s4023_s22 + $0x7d8] sm:$0xff]  ;;  %v1982_v3 = vld [vmem:[%s833_s21 + $0x8] sm:$0xff] }
 0x128   : > { %3665 = vmatpush3.bf16.msra.mxu0 %v3664_v35  ;;  %v3044_v35 = vld [vmem:[%s4023_s22 + $0x698] sm:$0xff] }
 0x129   : > { %3697 = vmatpush3.bf16.msra.mxu1 %v3696_v44  ;;  %3667 = vmatprep.subr.bf16.mxu0 %v3666_v46  ;;  %v3716_v44 = vpack.c.bf16 %v3026_v27, %v3025_v26  ;;  %v3075_v46 = vld [vmem:[%s4023_s22 + $0x790] sm:$0xff]  ;;  %v3718_v20 = vpack.c.bf16 %v3044_v35, %v3043_v45  ;;  %v3036_v26 = vld [vmem:[%s4023_s22 + $0x658] sm:$0xff]  ;;  %v3054_v45 = vld [vmem:[%s4023_s22 + $0x6e8] sm:$0xff] }
 0x12a   : > { %3699 = vmatprep.subr.bf16.mxu1 %v3698_v47  ;;  %v3028_v47 = vld [vmem:[%s4023_s22 + $0x618] sm:$0xff]  ;;  %v3067_v27 = vld [vmem:[%s4023_s22 + $0x750] sm:$0xff]  ;;  %v3085_v35 = vld [vmem:[%s4023_s22 + $0x7e0] sm:$0xff] }
 0x12b   : > { %v3720_v29 = vpack.c.bf16 %v3028_v47, %v3027_v38  ;;  %v3037_v38 = vld [vmem:[%s4023_s22 + $0x660] sm:$0xff]  ;;  %v3038_v47 = vld [vmem:[%s4023_s22 + $0x668] sm:$0xff] }
 0x12c   : > { %3669 = vmatpush3.bf16.msra.mxu0 %v3668_v40  ;;  %v3750_v40 = vpack.c.bf16 %v3076_v17, %v3075_v46  ;;  %v3768_v17 = vpack.c.bf16 %v3068_v32, %v3067_v27 }
 0x12d   : > { %3701 = vmatpush3.bf16.msra.mxu1 %v3700_v42  ;;  %3671 = vmatprep.subr.bf16.mxu0 %v3670_v49  ;;  %v3077_v42 = vld [vmem:[%s4023_s22 + $0x7a0] sm:$0xff]  ;;  %v3078_v49 = vld [vmem:[%s4023_s22 + $0x7a8] sm:$0xff] }
 0x12e   : > { %3703 = vmatprep.subr.bf16.mxu1 %v3702_v50  ;;  %v3029_v50 = vld [vmem:[%s4023_s22 + $0x620] sm:$0xff]  ;;  %v3754_v52 = vpack.c.bf16 %v3078_v49, %v3077_v42  ;;  %v3088_v42 = vld [vmem:[%s4023_s22 + $0x7f8] sm:$0xff]  ;;  %v3740_v49 = vpack.c.bf16 %v3038_v47, %v3037_v38 }
 0x130   : > { %3673 = vmatpush3.bf16.msra.mxu0 %v3672_v56  ;;  %v3724_v56 = vpack.c.bf16 %v3030_v51, %v3029_v50  ;;  %v3040_v50 = vld [vmem:[%s4023_s22 + $0x678] sm:$0xff] }
 0x131   : > { %3705 = vmatpush3.bf16.msra.mxu1 %v3704_v57  ;;  %3675 = vmatprep.subr.bf16.mxu0 %v3674_v58  ;;  %v3726_v57 = vpack.c.bf16 %v3048_v54, %v3047_v53  ;;  %v3031_v58 = vld [vmem:[%s4023_s22 + $0x630] sm:$0xff]  ;;  %v3853_v54 = vmov 0.0|0.0  }
 0x132   : > { %3707 = vmatprep.subr.bf16.mxu1 %v3706_v62  ;;  %v3064_v62 = vld [vmem:[%s4023_s22 + $0x738] sm:$0xff]  ;;  %v3728_v5 = vpack.c.bf16 %v3032_v59, %v3031_v58  ;;  %v2155_v58 = vld [vmem:[%s853_s0 + $0x8] sm:$0xff]  ;;  %v4459_v59 = vld [vmem:[%s812_s29] sm:$0x3]  ;;  %s838_s29 = scalar_lea.vmem %s4555_s7, %s4435_s25 }
 0x134   : > { %3677 = vmatpush3.bf16.msra.mxu0 %v3676_v6  ;;  %v3760_v6 = vpack.c.bf16 %v3064_v62, %v3063_v60  ;;  %v2157_v62 = vld [vmem:[%s853_s0 + $0x18] sm:$0xff] }
 0x135   : > { %3709 = vmatpush3.bf16.msra.mxu1 %v3708_v8  ;;  %3679 = vmatprep.subr.bf16.mxu0 %v3678_v0  ;;  %v3730_v8 = vpack.c.bf16 %v3050_v2, %v3049_v63  ;;  %v3033_v0 = vld [vmem:[%s4023_s22 + $0x640] sm:$0xff] }
 0x136   : > { %3711 = vmatprep.subr.bf16.mxu1 %v3710_v11  ;;  %v3066_v11 = vld [vmem:[%s4023_s22 + $0x748] sm:$0xff]  ;;  %v3732_v15 = vpack.c.bf16 %v3034_v9, %v3033_v0  ;;  %v1981_v2 = vld [vmem:[%s833_s21] sm:$0xff]  ;;  %v1984_v0 = vld [vmem:[%s833_s21 + $0x18] sm:$0xff]  ;;  %s858_s21 = scalar_lea.vmem %s4559_s11, %s4435_s25 }
 0x138   : > { %3681 = vmatpush3.bf16.msra.mxu0 %v3680_v16  ;;  %v3764_v16 = vpack.c.bf16 %v3066_v11, %v3065_v1  ;;  %v2314_v1 = vld [vmem:[%s843_s26 + $0x10] sm:$0xff]  ;;  %v3788_v11 = vpack.c.bf16 %v1984_v0, %v1983_v4 }
 0x139   : > { %3713 = vmatpush3.bf16.msra.mxu1 %v3712_v19  ;;  %3715 = vmatprep.subr.bf16.mxu0 %v3714_v23  ;;  %v3734_v19 = vpack.c.bf16 %v3052_v13, %v3051_v12  ;;  %v3035_v23 = vld [vmem:[%s4023_s22 + $0x650] sm:$0xff] }
 0x13a   : > { %3747 = vmatprep.subr.bf16.mxu1 %v3746_v31  ;;  %v3766_v31 = vpack.c.bf16 %v3084_v24, %v3083_v14  ;;  %v3736_v46 = vpack.c.bf16 %v3036_v26, %v3035_v23 }
 0x13b   : > { %1623 = vmatmul.mubr.f32.vlgmr.msra.gmra.mrb[6].mxu0 %v4224_v25  ;;  %v3061_v25 = vld [vmem:[%s4023_s22 + $0x720] sm:$0xff] }
 0x13c   : > { %1737 = vmatmul.mubr.f32.vlgmr.msra.gmra.mrb[6].mxu1 %v4230_v33  ;;  %3717 = vmatpush3.bf16.msra.mxu0 %v3716_v44  ;;  %v3062_v33 = vld [vmem:[%s4023_s22 + $0x728] sm:$0xff] }
 0x13d   : > { %1850 = vmatprep.mubr.f32.mxu0 %v4233_v34  ;;  %3749 = vmatpush3.bf16.msra.mxu1 %v3748_v18  ;;  %v3079_v34 = vld [vmem:[%s4023_s22 + $0x7b0] sm:$0xff]  ;;  %v3086_v44 = vld [vmem:[%s4023_s22 + $0x7e8] sm:$0xff]  ;;  %v3738_v18 = vpack.c.bf16 %v3054_v45, %v3053_v37 }
 0x13e   : > { %1964 = vmatprep.mubr.f32.mxu1 %v4241_v41  ;;  %3719 = vmatprep.subr.bf16.mxu0 %v3718_v20  ;;  %v3756_v41 = vpack.c.bf16 %v3062_v33, %v3061_v25  ;;  %v3758_v61 = vpack.c.bf16 %v3080_v55, %v3079_v34  ;;  %v3770_v20 = vpack.c.bf16 %v3086_v44, %v3085_v35  ;;  %v3071_v25 = vld [vmem:[%s4023_s22 + $0x770] sm:$0xff]  ;;  %v1985_v34 = vld [vmem:[%s848_s23] sm:$0xff]  ;;  %v1986_v55 = vld [vmem:[%s848_s23 + $0x8] sm:$0xff] }
 0x13f   : > { %3751 = vmatprep.subr.bf16.mxu1 %v3750_v40  ;;  %v3087_v40 = vld [vmem:[%s4023_s22 + $0x7f0] sm:$0xff] }
 0x140   : > { %3721 = vmatpush3.bf16.msra.mxu0 %v3720_v29  ;;  %v3772_v29 = vpack.c.bf16 %v3070_v21, %v3069_v48  ;;  %v3774_v51 = vpack.c.bf16 %v3088_v42, %v3087_v40 }
 0x141   : > { %3753 = vmatpush3.bf16.msra.mxu1 %v3752_v30  ;;  %3723 = vmatprep.subr.bf16.mxu0 %v3722_v43  ;;  %v3742_v30 = vpack.c.bf16 %v3056_v22, %v3055_v39  ;;  %v3039_v43 = vld [vmem:[%s4023_s22 + $0x670] sm:$0xff] }
 0x142   : > { %3755 = vmatprep.subr.bf16.mxu1 %v3754_v52  ;;  %v3072_v52 = vld [vmem:[%s4023_s22 + $0x778] sm:$0xff]  ;;  %v3744_v33 = vpack.c.bf16 %v3040_v50, %v3039_v43  ;;  %v3089_v43 = vld [vmem:[%s828_s3] ss:$0 sm:$0xff]  ;;  %s861_s3 = scalar_lea.vmem %s4560_s12, %s4583_s30 }
 0x143   : > { %v3776_v53 = vpack.c.bf16 %v3072_v52, %v3071_v25  ;;  %v2151_v25 = vld [vmem:[%s838_s29 + $0x8] sm:$0xff] }
 0x144   : > { %3725 = vmatpush3.bf16.msra.mxu0 %v3724_v56  ;;  %v1988_v56 = vld [vmem:[%s848_s23 + $0x18] sm:$0xff] }
 0x145   : > { %3757 = vmatpush3.bf16.msra.mxu1 %v3756_v41  ;;  %3727 = vmatprep.subr.bf16.mxu0 %v3726_v57  ;;  %v2154_v57 = vld [vmem:[%s853_s0] sm:$0xff] }
 0x146   : > { %3759 = vmatprep.subr.bf16.mxu1 %v3758_v61  ;;  %v3791_v60 = vpack.c.bf16 %v2155_v58, %v2154_v57  ;;  %v2156_v61 = vld [vmem:[%s853_s0 + $0x10] sm:$0xff]  ;;  %v2396_v58 = vld [vmem:[%s858_s21 + $0x18] sm:$0xff]  ;;  %s886_s0 = scalar_lea.vmem %s4567_s19, %s4448_s24 }
 0x147   : > { %v3794_v63 = vpack.c.bf16 %v2157_v62, %v2156_v61  ;;  %v2395_v57 = vld [vmem:[%s858_s21 + $0x10] sm:$0xff] }
 0x148   : > { %3729 = vmatpush3.bf16.msra.mxu0 %v3728_v5  ;;  %v3785_v5 = vpack.c.bf16 %v1982_v3, %v1981_v2 }
 0x149   : > { %3761 = vmatpush3.bf16.msra.mxu1 %v3760_v6  ;;  %3731 = vmatprep.subr.bf16.mxu0 %v3730_v8  ;;  %v2312_v6 = vld [vmem:[%s843_s26] sm:$0xff]  ;;  %v2313_v8 = vld [vmem:[%s843_s26 + $0x8] sm:$0xff] }
 0x14a   : > { %3763 = vmatprep.subr.bf16.mxu1 %v3762_v10  ;;  %v3803_v9 = vpack.c.bf16 %v2313_v8, %v2312_v6  ;;  %v2315_v10 = vld [vmem:[%s843_s26 + $0x18] sm:$0xff]  ;;  %s875_s26 = scalar_lea.vmem %s4564_s16, %s4435_s25 }
 0x14b   : > { %v3806_v12 = vpack.c.bf16 %v2315_v10, %v2314_v1  ;;  %v2481_v3 = vld [vmem:[%s875_s26] sm:$0xff]  ;;  %v2482_v4 = vld [vmem:[%s875_s26 + $0x8] sm:$0xff]  ;;  %v2484_v6 = vld [vmem:[%s875_s26 + $0x18] sm:$0xff] }
 0x14c   : > { %3733 = vmatpush3.bf16.msra.mxu0 %v3732_v15 }
 0x14d   : > { %3765 = vmatpush3.bf16.msra.mxu1 %v3764_v16  ;;  %3735 = vmatprep.subr.bf16.mxu0 %v3734_v19 }
 0x14e   : > { %3767 = vmatprep.subr.bf16.mxu1 %v3766_v31 }
 0x150   : > { %3737 = vmatpush3.bf16.msra.mxu0 %v3736_v46 }
 0x151   : > { %3769 = vmatpush3.bf16.msra.mxu1 %v3768_v17  ;;  %3739 = vmatprep.subr.bf16.mxu0 %v3738_v18 }
 0x152   : > { %3771 = vmatprep.subr.bf16.mxu1 %v3770_v20 }
 0x154   : > { %3741 = vmatpush3.bf16.msra.mxu0 %v3740_v49 }
 0x155   : > { %3773 = vmatpush3.bf16.msra.mxu1 %v3772_v29  ;;  %3743 = vmatprep.subr.bf16.mxu0 %v3742_v30 }
 0x156   : > { %3775 = vmatprep.subr.bf16.mxu1 %v3774_v51  ;;  %v2150_v51 = vld [vmem:[%s838_s29] sm:$0xff] }
 0x158   : > { %3745 = vmatpush3.bf16.msra.mxu0 %v3744_v33  ;;  %v3797_v33 = vpack.c.bf16 %v2151_v25, %v2150_v51 }
 0x159   : > { %3777 = vmatpush3.bf16.msra.mxu1 %v3776_v53  ;;  %3778 = vmatprep.subr.bf16.mxu0 %v3853_v54 }
 0x15a   : > { %3784 = vmatprep.subr.bf16.mxu1 %v3853_v54 }
 0x15b   : > { %1851 = vmatmul.mubr.f32.vlgmr.msra.gmra.mrb[8].mxu0 %v4255_v36  ;;  %v1987_v36 = vld [vmem:[%s848_s23 + $0x10] sm:$0xff]  ;;  %s867_s23 = scalar_lea.vmem %s4562_s14, %s4583_s30 }
 0x15c   : > { %1965 = vmatmul.mubr.f32.vlgmr.msra.gmra.mrb[8].mxu1 %v4264_v28  ;;  %3437 = vmatprep.mubr.msk.f32.mxu0 %vm3854_vm2, %v3851_v7  ;;  %v3779_v28 = vpack.c.bf16 %v1986_v55, %v1985_v34  ;;  %v3782_v41 = vpack.c.bf16 %v1988_v56, %v1987_v36  ;;  %v2152_v34 = vld [vmem:[%s838_s29 + $0x10] sm:$0xff]  ;;  %v2153_v55 = vld [vmem:[%s838_s29 + $0x18] sm:$0xff]  ;;  %v2394_v56 = vld [vmem:[%s858_s21 + $0x8] sm:$0xff] }
 0x15d   : > { %3448 = vmatprep.mubr.msk.f32.mxu1 %vm3854_vm2, %v3851_v7  ;;  %3786 = vmatpush3.bf16.msra.mxu1 %v3785_v5  ;;  %v3800_v36 = vpack.c.bf16 %v2153_v55, %v2152_v34  ;;  %v2483_v5 = vld [vmem:[%s875_s26 + $0x10] sm:$0xff] }
 0x15e   : > { %3780 = vmatpush3.bf16.msra.mxu0 %v3779_v28  ;;  %3787 = vmatprep.subr.bf16.mxu1 %v3853_v54  ;;  %v2393_v28 = vld [vmem:[%s858_s21] sm:$0xff]  ;;  %v3818_v8 = vpack.c.bf16 %v2484_v6, %v2483_v5 }
 0x15f   : > { %3781 = vmatprep.subr.bf16.mxu0 %v3853_v54 }
 0x161   : > { %3789 = vmatpush3.bf16.msra.mxu1 %v3788_v11 }
 0x162   : > { %3783 = vmatpush3.bf16.msra.mxu0 %v3782_v41  ;;  %3796 = vmatprep.subr.bf16.mxu1 %v3853_v54  ;;  %v3809_v41 = vpack.c.bf16 %v2394_v56, %v2393_v28 }
 0x163   : > { %3790 = vmatprep.subr.bf16.mxu0 %v3853_v54 }
 0x165   : > { %3438 = vmatmul.mubr.msk.f32.vlgmr.msra.gmra.mrb[10].mxu0 %vm1989_vm3, %v4459_v59 }
 0x166   : > { %3792 = vmatpush3.bf16.msra.mxu0 %v3791_v60  ;;  %3459 = vmatprep.mubr.msk.f32.mxu0 %vm3854_vm2, %v3851_v7  ;;  %v3812_v60 = vpack.c.bf16 %v2396_v58, %v2395_v57 }
 0x167   : > { %3793 = vmatprep.subr.bf16.mxu0 %v3853_v54 }
 0x16a   : > { %3795 = vmatpush3.bf16.msra.mxu0 %v3794_v63 }
 0x16b   : > { %3802 = vmatprep.subr.bf16.mxu0 %v3853_v54 }
 0x16d   : > { %3460 = vmatmul.mubr.msk.f32.vlgmr.msra.gmra.mrb[12].mxu0 %vm1989_vm3, %v4459_v59 }
 0x16e   : > { %3804 = vmatpush3.bf16.msra.mxu0 %v3803_v9  ;;  %3481 = vmatprep.mubr.msk.f32.mxu0 %vm3854_vm2, %v3851_v7  ;;  %v3092_v9 = vld [vmem:[%s861_s3] ss:$0 sm:$0xff] }
 0x16f   : > { %3805 = vmatprep.subr.bf16.mxu0 %v3853_v54 }
 0x172   : > { %3807 = vmatpush3.bf16.msra.mxu0 %v3806_v12 }
 0x173   : > { %3814 = vmatprep.subr.bf16.mxu0 %v3853_v54 }
 0x1ce   : > { %v3146_v13 = vpop.f32.mrb[2].mxu0  ;;  %v3181_v14 = vpop.f32.mrb[2].mxu1 }
 0x1cf   : > { %v3147_v24 = vpop.f32.mrb[3].mxu0  ;;  %v3182_v16 = vpop.f32.mrb[3].mxu1 }
 0x1d0   : > { %v3148_v15 = vadd.f32 %v3147_v24, %v3146_v13  ;;  %v3183_v19 = vadd.f32 %v3182_v16, %v3181_v14  ;;  %v3096_v24 = vld [vmem:[%s864_s28] ss:$0 sm:$0xff] }
 0x1d2   : > { %v1284_v23 = vadd.f32 %v3183_v19, %v3148_v15 }
 0x1ee   : > { %v3216_v26 = vpop.f32.mrb[4].mxu0  ;;  %v3251_v27 = vpop.f32.mrb[4].mxu1 }
 0x1ef   : > { %v3217_v31 = vpop.f32.mrb[5].mxu0  ;;  %v3252_v37 = vpop.f32.mrb[5].mxu1 }
 0x1f0   : > { %v3218_v32 = vadd.f32 %v3217_v31, %v3216_v26  ;;  %v3253_v45 = vadd.f32 %v3252_v37, %v3251_v27  ;;  %v3100_v37 = vld [vmem:[%s870_s2] ss:$0 sm:$0xff]  ;;  %s882_s2 = scalar_lea.vmem %s4580_s20, %s4448_s24 }
 0x1f2   : > { %v1400_v35 = vadd.f32 %v3218_v32, %v1284_v23 }
 0x1f4   : > { %v1514_v44 = vadd.f32 %v3253_v45, %v1400_v35 }
 0x20e   : > { %v3286_v46 = vpop.f32.mrb[6].mxu0 }
 0x20f   : > { %v3321_v17 = vpop.f32.mrb[6].mxu1  ;;  %v3287_v18 = vpop.f32.mrb[7].mxu0 }
 0x210   : > { %v3288_v38 = vadd.f32 %v3287_v18, %v3286_v46  ;;  %v3322_v47 = vpop.f32.mrb[7].mxu1  ;;  %v3098_v46 = vld [vmem:[%s867_s23] ss:$0 sm:$0xff] }
 0x211   : > { %v3323_v48 = vadd.f32 %v3322_v47, %v3321_v17 }
 0x212   : > { %v1628_v20 = vadd.f32 %v3288_v38, %v1514_v44 }
 0x214   : > { %v1742_v21 = vadd.f32 %v3323_v48, %v1628_v20 }
 0x22e   : > { %v3356_v39 = vpop.f32.mrb[8].mxu0 }
 0x22f   : > { %v3391_v22 = vpop.f32.mrb[8].mxu1  ;;  %v3357_v40 = vpop.f32.mrb[9].mxu0 }
 0x230   : > { %v3358_v42 = vadd.f32 %v3357_v40, %v3356_v39  ;;  %v3392_v49 = vpop.f32.mrb[9].mxu1 }
 0x231   : > { %v3393_v29 = vadd.f32 %v3392_v49, %v3391_v22 }
 0x232   : > { %v1856_v30 = vadd.f32 %v3358_v42, %v1742_v21  ;;  %v3102_v42 = vld [vmem:[%s878_s27] ss:$0 sm:$0xff] }
 0x234   : > { %v1970_v50 = vadd.f32 %v3393_v29, %v1856_v30 }
 0x236   : > { %v1978_v52 = vadd.f32 %v3089_v43, %v1970_v50 }
 0x238   : > { %v1979_v53 = vmax.f32 %v1978_v52, 0.0  ;;  %v2059_v61 = vpop.f32.mrb[10].mxu0 }
 0x239   : > { %v3439_v62 = vpop.f32.mrb[11].mxu0 }
 0x23a   : > { %3449 = vmatmul.mubr.msk.f32.vlgmr.msra.gmra.mrb[10].mxu1 %vm1989_vm3, %v1979_v53  ;;  %3482 = vmatmul.mubr.msk.f32.vlgmr.msra.gmra.mrb[14].mxu0 %vm1989_vm3, %v1979_v53 }
 0x23b   : > { %3798 = vmatpush3.bf16.msra.mxu1 %v3797_v33  ;;  %3470 = vmatprep.mubr.msk.f32.mxu1 %vm3854_vm2, %v3851_v7 }
 0x23c   : > { %3799 = vmatprep.subr.bf16.mxu1 %v3853_v54  ;;  %3503 = vmatprep.mubr.msk.f32.mxu0 %vm3854_vm2, %v3851_v7 }
 0x23f   : > { %3801 = vmatpush3.bf16.msra.mxu1 %v3800_v36 }
 0x240   : > { %3808 = vmatprep.subr.bf16.mxu1 %v3853_v54  ;;  %v2224_v63 = vpop.f32.mrb[12].mxu0 }
 0x241   : > { %v3461_v2 = vpop.f32.mrb[13].mxu0 }
 0x242   : > { %3471 = vmatmul.mubr.msk.f32.vlgmr.msra.gmra.mrb[12].mxu1 %vm1989_vm3, %v1979_v53 }
 0x243   : > { %3810 = vmatpush3.bf16.msra.mxu1 %v3809_v41  ;;  %3492 = vmatprep.mubr.msk.f32.mxu1 %vm3854_vm2, %v3851_v7  ;;  %v3815_v7 = vpack.c.bf16 %v2482_v4, %v2481_v3 }
 0x244   : > { %3811 = vmatprep.subr.bf16.mxu1 %v3853_v54 }
 0x245   : > { %3816 = vmatpush3.bf16.msra.mxu0 %v3815_v7 }
 0x246   : > { %3817 = vmatprep.subr.bf16.mxu0 %v3853_v54 }
 0x247   : > { %3813 = vmatpush3.bf16.msra.mxu1 %v3812_v60 }
 0x249   : > { %3819 = vmatpush3.bf16.msra.mxu0 %v3818_v8 }
 0x24a   : > { %3493 = vmatmul.mubr.msk.f32.vlgmr.msra.gmra.mrb[14].mxu1 %vm1989_vm3, %v4459_v59 }
 0x30d   : > { %v2132_v0 = vpop.f32.mrb[10].mxu1  ;;  %v2389_v1 = vpop.f32.mrb[14].mxu0 }
 0x30e   : > { %v2133_v10 = vadd.f32 %v2132_v0, %v2059_v61  ;;  %v3450_v11 = vpop.f32.mrb[11].mxu1  ;;  %v3483_v12 = vpop.f32.mrb[15].mxu0  ;;  %v2390_v18 = vadd.f32 %v3098_v46, %v2389_v1 }
 0x310   : > { %v2143_v13 = vadd.f32 %v3092_v9, %v2133_v10 }
 0x312   : > { %v3093_v14 = vmul.f32 -1.442695, %v2143_v13 }
 0x314   : > { %3833 = vpow2.f32 %v3093_v14 }
 0x315   : > { %v2294_v54 = vpop.f32.mrb[12].mxu1 }
 0x316   : > { %v2295_v15 = vadd.f32 %v2294_v54, %v2224_v63  ;;  %v3472_v16 = vpop.f32.mrb[13].mxu1 }
 0x318   : > { %v2305_v19 = vadd.f32 %v3096_v24, %v2295_v15 }
 0x31a   : > { %v3097_v23 = vmul.f32 -1.442695, %v2305_v19 }
 0x31c   : > { %3835 = vpow2.f32 %v3097_v23 }
 0x31d   : > { %v2470_v26 = vpop.f32.mrb[14].mxu1 }
 0x31e   : > { %v3834_v27 = vpop.eup %3833  ;;  %v3494_v31 = vpop.f32.mrb[15].mxu1  ;;  %v2471_v44 = vadd.f32 %v3100_v37, %v2470_v26 }
 0x31f   : > { %v2147_v32 = vadd.f32 1.0, %v3834_v27 }
 0x321   : > { %3837 = vrcp.f32 %v2147_v32 }
 0x326   : > { %v3836_v45 = vpop.eup %3835 }
 0x327   : > { %v2309_v35 = vadd.f32 1.0, %v3836_v45 }
 0x329   : > { %3839 = vrcp.f32 %v2309_v35 }
 0x32b   : > { %v3838_v17 = vpop.eup %3837 }
 0x32c   : > { %v2474_v38 = vmul.f32 %v3838_v17, %v2471_v44 }
 0x32e   : > { %v2475_v47 = vadd.f32 %v2474_v38, %v2390_v18 }
 0x330   : > { %3841 = vtanh.f32 %v2475_v47 }
 0x333   : > { %v3840_v48 = vpop.eup %3839 }
 0x334   : > { %v2477_v20 = vsub.f32 1.0, %v3840_v48  ;;  %v2479_v22 = vmul.f32 %v3840_v48, %v4459_v59 }
 0x33a   : > { %v3842_v21 = vpop.eup %3841 }
 0x33b   : > { %v2478_v39 = vmul.f32 %v3842_v21, %v2477_v20 }
 0x33d   : > { %v2480_v40 = vadd.f32 %v2479_v22, %v2478_v39 }
 0x33f   : > { %3504 = vmatmul.mubr.msk.f32.vlgmr.msra.gmra.mrb[16].mxu0 %vm1989_vm3, %v2480_v40  ;;  %2568 = vst.msk [vmem:[%s886_s0] sm:$0x3] %vm2567_vm4, %v2480_v40 }
 0x412   : > { %v2561_v49 = vpop.f32.mrb[16].mxu0 }
 0x413   : > { %v2562_v59 = vadd.f32 %v3102_v42, %v2561_v49  ;;  %v3505_v29 = vpop.f32.mrb[17].mxu0 }
 0x415   : > { %2566 = vst.msk [vmem:[%s882_s2] sm:$0x3] %vm2565_vm5, %v2562_v59 }
 0x416 PF: > { %s4581_s21 = sld [smem:[#allocation2_spill]] }
 0x41c   : > { %s30_s0 = sadd.s32 1, %s4581_s21  }
 0x41d   : > { %p27_p4 = scmp.ge.s32.totalorder %s30_s0, 4  }
 0x41f   :  { %29 = sbr.rel (!%p27_p4) target bundleno = 6 (0x6), region = 190 }

</bundles_post_ra>
